<compile_context>
chip_gen: v5e
topology: v5e:2x2
jax: 0.10.0
libtpu: 0.0.40
codegen_flags: <defaults>
</compile_context>

<pallas_src>
import jax
import jax.numpy as jnp
from jax.experimental import pallas as pl
from jax.experimental.pallas import tpu as pltpu


def _round_up(x, m):
    return ((x + m - 1) // m) * m


def _critic_kernel(st_ref, pa_ref, ac_ref,
                   w1s_ref, w1p_ref, w1a_ref, b14_ref,
                   w2_ref, b2_ref, w5_ref, b5_ref,
                   w36_ref, b36_ref,
                   q_ref):
    f32 = jnp.float32
    bf16 = jnp.bfloat16

    # ---- layer 1, both heads at once: sa @ [w1 || w4] done as three partial
    #      matmuls so `sa` is never materialized (no wrapper concat). ----
    y = (jnp.dot(st_ref[...], w1s_ref[...], preferred_element_type=f32)
         + jnp.dot(pa_ref[...], w1p_ref[...], preferred_element_type=f32)
         + jnp.dot(ac_ref[...], w1a_ref[...], preferred_element_type=f32))
    y = jnp.maximum(y + b14_ref[...], 0.0)

    H = y.shape[-1] // 2                       # 256
    h = y[:, :H].astype(bf16)                  # Q1 head
    g = y[:, H:].astype(bf16)                  # Q2 head

    # ---- layer 2, per head ----
    h2 = jnp.maximum(
        jnp.dot(h, w2_ref[...], preferred_element_type=f32) + b2_ref[...], 0.0)
    g2 = jnp.maximum(
        jnp.dot(g, w5_ref[...], preferred_element_type=f32) + b5_ref[...], 0.0)

    # ---- output layer: block-diagonal [[w3, 0], [0, w6]] -> one (TB, 2) matmul ----
    hg = jnp.concatenate([h2.astype(bf16), g2.astype(bf16)], axis=-1)
    q_ref[...] = (jnp.dot(hg, w36_ref[...], preferred_element_type=f32)
                  + b36_ref[...])


def pack_critic_params(params, state_dim, action_dim):
    """One-time packing: fuse twin heads and cast weights to bf16."""
    S, A = state_dim, action_dim
    bf16 = jnp.bfloat16
    H = params["w2"].shape[0]                                    # 256

    w14 = jnp.concatenate([params["w1"], params["w4"]], axis=1)  # (S+2A, 2H)
    b14 = jnp.concatenate([params["b1"], params["b4"]], axis=1)  # (1, 2H)

    w36 = jnp.zeros((2 * H, 2), jnp.float32)
    w36 = w36.at[:H, 0:1].set(params["w3"]).at[H:, 1:2].set(params["w6"])
    b36 = jnp.concatenate([params["b3"], params["b6"]], axis=1)  # (1, 2)

    return dict(
        w1s=w14[:S].astype(bf16),            # rows that multiply `state`
        w1p=w14[S:S + A].astype(bf16),       # rows that multiply `prev_action`
        w1a=w14[S + A:].astype(bf16),        # rows that multiply `action`
        b14=b14.astype(jnp.float32),
        w2=params["w2"].astype(bf16), b2=params["b2"].astype(jnp.float32),
        w5=params["w5"].astype(bf16), b5=params["b5"].astype(jnp.float32),
        w36=w36.astype(bf16), b36=b36.astype(jnp.float32),
    )


def critic_forward(state, action, prev_action, packed, *, block_b=256):
    """Pallas equivalent of Critic.forward -> (q1, q2)."""
    B, S = state.shape
    A = action.shape[1]
    H2 = packed["b14"].shape[1]              # 2 * hidden (= 512)
    hidden = H2 // 2
    in_dim = S + 2 * A

    # Batch tile: multiple of 16 (bf16 sublane packing); weights stay resident.
    TB = min(_round_up(block_b, 16), _round_up(B, 16))
    B_pad = _round_up(B, TB)
    grid = (B_pad // TB,)

    def prep(x):
        x = x.astype(jnp.bfloat16)
        if B_pad != B:
            x = jnp.pad(x, ((0, B_pad - B), (0, 0)))
        return x

    st, pa, ac = prep(state), prep(prev_action), prep(action)

    batch_map = lambda i: (i, 0)
    resident = lambda i: (0, 0)

    weight_args = (packed["w1s"], packed["w1p"], packed["w1a"], packed["b14"],
                   packed["w2"], packed["b2"], packed["w5"], packed["b5"],
                   packed["w36"], packed["b36"])

    in_specs = ([pl.BlockSpec((TB, S), batch_map),
                 pl.BlockSpec((TB, A), batch_map),
                 pl.BlockSpec((TB, A), batch_map)]
                + [pl.BlockSpec(w.shape, resident) for w in weight_args])
    out_specs = pl.BlockSpec((TB, 2), batch_map)

    flops = 2 * B_pad * (in_dim * H2 + 2 * hidden * hidden + H2 * 2)
    bytes_accessed = (sum(int(x.size) * x.dtype.itemsize
                          for x in (st, pa, ac) + weight_args)
                      + B_pad * 2 * 4)

    q = pl.pallas_call(
        _critic_kernel,
        out_shape=jax.ShapeDtypeStruct((B_pad, 2), jnp.float32),
        grid=grid,
        in_specs=in_specs,
        out_specs=out_specs,
        compiler_params=pltpu.CompilerParams(
            dimension_semantics=("parallel",)),
        cost_estimate=pl.CostEstimate(flops=flops, transcendentals=0,
                                      bytes_accessed=bytes_accessed),
    )(st, pa, ac, *weight_args)

    q = q[:B]
    return q[:, 0:1], q[:, 1:2]


def init_params(key, state_dim, action_dim, hidden=256):
    """Deterministic synthetic init. Weights stored as (in, out)."""
    in_dim = state_dim + 2 * action_dim
    ks = jax.random.split(key, 12)

    def lin(kw, kb, fan_in, fan_out):
        bound = 1.0 / jnp.sqrt(fan_in)
        w = jax.random.uniform(kw, (fan_in, fan_out), jnp.float32, -bound, bound)
        b = jax.random.uniform(kb, (1, fan_out), jnp.float32, -bound, bound)
        return w, b

    p = {}
    p["w1"], p["b1"] = lin(ks[0], ks[1], in_dim, hidden)
    p["w2"], p["b2"] = lin(ks[2], ks[3], hidden, hidden)
    p["w3"], p["b3"] = lin(ks[4], ks[5], hidden, 1)
    p["w4"], p["b4"] = lin(ks[6], ks[7], in_dim, hidden)
    p["w5"], p["b5"] = lin(ks[8], ks[9], hidden, hidden)
    p["w6"], p["b6"] = lin(ks[10], ks[11], hidden, 1)
    return p


def _reference_forward(state, action, prev_action, params):
    """Pure-JAX reference with the same bf16-weight / f32-accum numerics."""
    bf16 = jnp.bfloat16

    def mm(x, w):
        return jnp.dot(x.astype(bf16), w.astype(bf16),
                       preferred_element_type=jnp.float32)

    sa = jnp.concatenate([state, prev_action, action], axis=1)
    h = jax.nn.relu(mm(sa, params["w1"]) + params["b1"])
    h = jax.nn.relu(mm(h, params["w2"]) + params["b2"])
    q1 = mm(h, params["w3"]) + params["b3"]
    g = jax.nn.relu(mm(sa, params["w4"]) + params["b4"])
    g = jax.nn.relu(mm(g, params["w5"]) + params["b5"])
    q2 = mm(g, params["w6"]) + params["b6"]
    return q1, q2


if __name__ == "__main__":
    key = jax.random.PRNGKey(0)
    k_state, k_act, k_prev, k_params = jax.random.split(key, 4)

    batch, state_dim, action_dim = 40, 8, 4
    state = jax.random.normal(k_state, (batch, state_dim), jnp.float32)
    action = jax.random.normal(k_act, (batch, action_dim), jnp.float32)
    prev_action = jax.random.normal(k_prev, (batch, action_dim), jnp.float32)

    params = init_params(k_params, state_dim, action_dim)
    packed = pack_critic_params(params, state_dim, action_dim)

    # Single-block path (TB covers the whole padded batch).
    q1, q2 = critic_forward(state, action, prev_action, packed)
    # Multi-step batch grid path (TB=16 -> 3 grid steps, exercises padding).
    q1t, q2t = critic_forward(state, action, prev_action, packed, block_b=16)
    jax.block_until_ready((q1, q2, q1t, q2t))

    r1, r2 = _reference_forward(state, action, prev_action, params)
    assert q1.shape == (batch, 1) and q2.shape == (batch, 1)
    for got1, got2 in ((q1, q2), (q1t, q2t)):
        assert jnp.allclose(got1, r1, atol=5e-3, rtol=5e-3)
        assert jnp.allclose(got2, r2, atol=5e-3, rtol=5e-3)

    print("KERNEL_OK")
</pallas_src>

<mosaic_0001>
module attributes {stable_mosaic.version = 11 : i64} {
  func.func @_critic_kernel(%arg0: i32, %arg1: memref<48x8xbf16, #tpu.memory_space<vmem>>, %arg2: memref<48x4xbf16, #tpu.memory_space<vmem>>, %arg3: memref<48x4xbf16, #tpu.memory_space<vmem>>, %arg4: memref<8x512xbf16, #tpu.memory_space<vmem>>, %arg5: memref<4x512xbf16, #tpu.memory_space<vmem>>, %arg6: memref<4x512xbf16, #tpu.memory_space<vmem>>, %arg7: memref<1x512xf32, #tpu.memory_space<vmem>>, %arg8: memref<256x256xbf16, #tpu.memory_space<vmem>>, %arg9: memref<1x256xf32, #tpu.memory_space<vmem>>, %arg10: memref<256x256xbf16, #tpu.memory_space<vmem>>, %arg11: memref<1x256xf32, #tpu.memory_space<vmem>>, %arg12: memref<512x2xbf16, #tpu.memory_space<vmem>>, %arg13: memref<1x2xf32, #tpu.memory_space<vmem>>, %arg14: memref<48x2xf32, #tpu.memory_space<vmem>>) attributes {dimension_semantics = [#tpu.dimension_semantics<parallel>], iteration_bounds = array<i64: 1>, scalar_prefetch = 0 : i64, scratch_operands = 0 : i64, tpu.core_type = #tpu.core_type<tc>, window_params = [{transform_indices = @transform_0, window_bounds = array<i64: 48, 8>}, {transform_indices = @transform_1, window_bounds = array<i64: 48, 4>}, {transform_indices = @transform_2, window_bounds = array<i64: 48, 4>}, {pipeline_mode = #tpu.pipeline_mode<synchronous>, transform_indices = @transform_3, window_bounds = array<i64: 8, 512>}, {pipeline_mode = #tpu.pipeline_mode<synchronous>, transform_indices = @transform_4, window_bounds = array<i64: 4, 512>}, {pipeline_mode = #tpu.pipeline_mode<synchronous>, transform_indices = @transform_5, window_bounds = array<i64: 4, 512>}, {pipeline_mode = #tpu.pipeline_mode<synchronous>, transform_indices = @transform_6, window_bounds = array<i64: 1, 512>}, {pipeline_mode = #tpu.pipeline_mode<synchronous>, transform_indices = @transform_7, window_bounds = array<i64: 256, 256>}, {pipeline_mode = #tpu.pipeline_mode<synchronous>, transform_indices = @transform_8, window_bounds = array<i64: 1, 256>}, {pipeline_mode = #tpu.pipeline_mode<synchronous>, transform_indices = @transform_9, window_bounds = array<i64: 256, 256>}, {pipeline_mode = #tpu.pipeline_mode<synchronous>, transform_indices = @transform_10, window_bounds = array<i64: 1, 256>}, {pipeline_mode = #tpu.pipeline_mode<synchronous>, transform_indices = @transform_11, window_bounds = array<i64: 512, 2>}, {pipeline_mode = #tpu.pipeline_mode<synchronous>, transform_indices = @transform_12, window_bounds = array<i64: 1, 2>}, {transform_indices = @transform_13, window_bounds = array<i64: 48, 2>}]} {
    %c0 = arith.constant 0 : index
    %c0_0 = arith.constant 0 : index
    %0 = vector.load %arg1[%c0, %c0_0] : memref<48x8xbf16, #tpu.memory_space<vmem>>, vector<48x8xbf16>
    %c0_1 = arith.constant 0 : index
    %c0_2 = arith.constant 0 : index
    %1 = vector.load %arg4[%c0_1, %c0_2] : memref<8x512xbf16, #tpu.memory_space<vmem>>, vector<8x512xbf16>
    %cst = arith.constant dense<0.000000e+00> : vector<48x512xf32>
    %2 = tpu.matmul %0, %1, %cst {dimension_numbers = #tpu.dot_dimension_numbers<[1], [0], [0], [1], [0, 0, 1, 1], [], []>} : vector<48x8xbf16>, vector<8x512xbf16>, vector<48x512xf32> -> vector<48x512xf32>
    %c0_3 = arith.constant 0 : index
    %c0_4 = arith.constant 0 : index
    %3 = vector.load %arg2[%c0_3, %c0_4] : memref<48x4xbf16, #tpu.memory_space<vmem>>, vector<48x4xbf16>
    %c0_5 = arith.constant 0 : index
    %c0_6 = arith.constant 0 : index
    %4 = vector.load %arg5[%c0_5, %c0_6] : memref<4x512xbf16, #tpu.memory_space<vmem>>, vector<4x512xbf16>
    %cst_7 = arith.constant dense<0.000000e+00> : vector<48x512xf32>
    %5 = tpu.matmul %3, %4, %cst_7 {dimension_numbers = #tpu.dot_dimension_numbers<[1], [0], [0], [1], [0, 0, 1, 1], [], []>} : vector<48x4xbf16>, vector<4x512xbf16>, vector<48x512xf32> -> vector<48x512xf32>
    %6 = arith.addf %2, %5 : vector<48x512xf32>
    %c0_8 = arith.constant 0 : index
    %c0_9 = arith.constant 0 : index
    %7 = vector.load %arg3[%c0_8, %c0_9] : memref<48x4xbf16, #tpu.memory_space<vmem>>, vector<48x4xbf16>
    %c0_10 = arith.constant 0 : index
    %c0_11 = arith.constant 0 : index
    %8 = vector.load %arg6[%c0_10, %c0_11] : memref<4x512xbf16, #tpu.memory_space<vmem>>, vector<4x512xbf16>
    %cst_12 = arith.constant dense<0.000000e+00> : vector<48x512xf32>
    %9 = tpu.matmul %7, %8, %cst_12 {dimension_numbers = #tpu.dot_dimension_numbers<[1], [0], [0], [1], [0, 0, 1, 1], [], []>} : vector<48x4xbf16>, vector<4x512xbf16>, vector<48x512xf32> -> vector<48x512xf32>
    %10 = arith.addf %6, %9 : vector<48x512xf32>
    %c0_13 = arith.constant 0 : index
    %c0_14 = arith.constant 0 : index
    %11 = vector.load %arg7[%c0_13, %c0_14] : memref<1x512xf32, #tpu.memory_space<vmem>>, vector<1x512xf32>
    %12 = vector.broadcast %11 : vector<1x512xf32> to vector<48x512xf32>
    %13 = arith.addf %10, %12 : vector<48x512xf32>
    %cst_15 = arith.constant 0.000000e+00 : f32
    %14 = vector.broadcast %cst_15 : f32 to vector<48x512xf32>
    %15 = arith.maximumf %13, %14 : vector<48x512xf32>
    %16 = vector.extract_strided_slice %15 {offsets = [0, 0], sizes = [48, 256], strides = [1, 1]} : vector<48x512xf32> to vector<48x256xf32>
    %17 = arith.truncf %16 : vector<48x256xf32> to vector<48x256xbf16>
    %18 = vector.extract_strided_slice %15 {offsets = [0, 256], sizes = [48, 256], strides = [1, 1]} : vector<48x512xf32> to vector<48x256xf32>
    %19 = arith.truncf %18 : vector<48x256xf32> to vector<48x256xbf16>
    %c0_16 = arith.constant 0 : index
    %c0_17 = arith.constant 0 : index
    %20 = vector.load %arg8[%c0_16, %c0_17] : memref<256x256xbf16, #tpu.memory_space<vmem>>, vector<256x256xbf16>
    %cst_18 = arith.constant dense<0.000000e+00> : vector<48x256xf32>
    %21 = tpu.matmul %17, %20, %cst_18 {dimension_numbers = #tpu.dot_dimension_numbers<[1], [0], [0], [1], [0, 0, 1, 1], [], []>} : vector<48x256xbf16>, vector<256x256xbf16>, vector<48x256xf32> -> vector<48x256xf32>
    %c0_19 = arith.constant 0 : index
    %c0_20 = arith.constant 0 : index
    %22 = vector.load %arg9[%c0_19, %c0_20] : memref<1x256xf32, #tpu.memory_space<vmem>>, vector<1x256xf32>
    %23 = vector.broadcast %22 : vector<1x256xf32> to vector<48x256xf32>
    %24 = arith.addf %21, %23 : vector<48x256xf32>
    %cst_21 = arith.constant 0.000000e+00 : f32
    %25 = vector.broadcast %cst_21 : f32 to vector<48x256xf32>
    %26 = arith.maximumf %24, %25 : vector<48x256xf32>
    %c0_22 = arith.constant 0 : index
    %c0_23 = arith.constant 0 : index
    %27 = vector.load %arg10[%c0_22, %c0_23] : memref<256x256xbf16, #tpu.memory_space<vmem>>, vector<256x256xbf16>
    %cst_24 = arith.constant dense<0.000000e+00> : vector<48x256xf32>
    %28 = tpu.matmul %19, %27, %cst_24 {dimension_numbers = #tpu.dot_dimension_numbers<[1], [0], [0], [1], [0, 0, 1, 1], [], []>} : vector<48x256xbf16>, vector<256x256xbf16>, vector<48x256xf32> -> vector<48x256xf32>
    %c0_25 = arith.constant 0 : index
    %c0_26 = arith.constant 0 : index
    %29 = vector.load %arg11[%c0_25, %c0_26] : memref<1x256xf32, #tpu.memory_space<vmem>>, vector<1x256xf32>
    %30 = vector.broadcast %29 : vector<1x256xf32> to vector<48x256xf32>
    %31 = arith.addf %28, %30 : vector<48x256xf32>
    %cst_27 = arith.constant 0.000000e+00 : f32
    %32 = vector.broadcast %cst_27 : f32 to vector<48x256xf32>
    %33 = arith.maximumf %31, %32 : vector<48x256xf32>
    %34 = arith.truncf %26 : vector<48x256xf32> to vector<48x256xbf16>
    %35 = arith.truncf %33 : vector<48x256xf32> to vector<48x256xbf16>
    %36 = tpu.concatenate %34, %35 in 1 : vector<48x256xbf16>, vector<48x256xbf16> -> vector<48x512xbf16>
    %c0_28 = arith.constant 0 : index
    %c0_29 = arith.constant 0 : index
    %37 = vector.load %arg12[%c0_28, %c0_29] : memref<512x2xbf16, #tpu.memory_space<vmem>>, vector<512x2xbf16>
    %cst_30 = arith.constant dense<0.000000e+00> : vector<48x2xf32>
    %38 = tpu.matmul %36, %37, %cst_30 {dimension_numbers = #tpu.dot_dimension_numbers<[1], [0], [0], [1], [0, 0, 1, 1], [], []>} : vector<48x512xbf16>, vector<512x2xbf16>, vector<48x2xf32> -> vector<48x2xf32>
    %c0_31 = arith.constant 0 : index
    %c0_32 = arith.constant 0 : index
    %39 = vector.load %arg13[%c0_31, %c0_32] : memref<1x2xf32, #tpu.memory_space<vmem>>, vector<1x2xf32>
    %40 = vector.broadcast %39 : vector<1x2xf32> to vector<48x2xf32>
    %41 = arith.addf %38, %40 : vector<48x2xf32>
    %c0_33 = arith.constant 0 : index
    %c0_34 = arith.constant 0 : index
    %42 = vector.load %arg14[%c0_33, %c0_34] : memref<48x2xf32, #tpu.memory_space<vmem>>, vector<48x2xf32>
    tpu.vector_store %arg14[%c0_33, %c0_34], %41 {strides = array<i32>} : memref<48x2xf32, #tpu.memory_space<vmem>>, vector<48x2xf32>,
    return
  }
  func.func @transform_0(%arg0: i32) -> (i32, i32) {
    %c0_i32 = arith.constant 0 : i32
    %c0_i32_0 = arith.constant 0 : i32
    return %arg0, %c0_i32 : i32, i32
  }
  func.func @transform_1(%arg0: i32) -> (i32, i32) {
    %c0_i32 = arith.constant 0 : i32
    %c0_i32_0 = arith.constant 0 : i32
    return %arg0, %c0_i32 : i32, i32
  }
  func.func @transform_2(%arg0: i32) -> (i32, i32) {
    %c0_i32 = arith.constant 0 : i32
    %c0_i32_0 = arith.constant 0 : i32
    return %arg0, %c0_i32 : i32, i32
  }
  func.func @transform_3(%arg0: i32) -> (i32, i32) {
    %c0_i32 = arith.constant 0 : i32
    %c0_i32_0 = arith.constant 0 : i32
    %c0_i32_1 = arith.constant 0 : i32
    return %c0_i32, %c0_i32_0 : i32, i32
  }
  func.func @transform_4(%arg0: i32) -> (i32, i32) {
    %c0_i32 = arith.constant 0 : i32
    %c0_i32_0 = arith.constant 0 : i32
    %c0_i32_1 = arith.constant 0 : i32
    return %c0_i32, %c0_i32_0 : i32, i32
  }
  func.func @transform_5(%arg0: i32) -> (i32, i32) {
    %c0_i32 = arith.constant 0 : i32
    %c0_i32_0 = arith.constant 0 : i32
    %c0_i32_1 = arith.constant 0 : i32
    return %c0_i32, %c0_i32_0 : i32, i32
  }
  func.func @transform_6(%arg0: i32) -> (i32, i32) {
    %c0_i32 = arith.constant 0 : i32
    %c0_i32_0 = arith.constant 0 : i32
    %c0_i32_1 = arith.constant 0 : i32
    return %c0_i32, %c0_i32_0 : i32, i32
  }
  func.func @transform_7(%arg0: i32) -> (i32, i32) {
    %c0_i32 = arith.constant 0 : i32
    %c0_i32_0 = arith.constant 0 : i32
    %c0_i32_1 = arith.constant 0 : i32
    return %c0_i32, %c0_i32_0 : i32, i32
  }
  func.func @transform_8(%arg0: i32) -> (i32, i32) {
    %c0_i32 = arith.constant 0 : i32
    %c0_i32_0 = arith.constant 0 : i32
    %c0_i32_1 = arith.constant 0 : i32
    return %c0_i32, %c0_i32_0 : i32, i32
  }
  func.func @transform_9(%arg0: i32) -> (i32, i32) {
    %c0_i32 = arith.constant 0 : i32
    %c0_i32_0 = arith.constant 0 : i32
    %c0_i32_1 = arith.constant 0 : i32
    return %c0_i32, %c0_i32_0 : i32, i32
  }
  func.func @transform_10(%arg0: i32) -> (i32, i32) {
    %c0_i32 = arith.constant 0 : i32
    %c0_i32_0 = arith.constant 0 : i32
    %c0_i32_1 = arith.constant 0 : i32
    return %c0_i32, %c0_i32_0 : i32, i32
  }
  func.func @transform_11(%arg0: i32) -> (i32, i32) {
    %c0_i32 = arith.constant 0 : i32
    %c0_i32_0 = arith.constant 0 : i32
    %c0_i32_1 = arith.constant 0 : i32
    return %c0_i32, %c0_i32_0 : i32, i32
  }
  func.func @transform_12(%arg0: i32) -> (i32, i32) {
    %c0_i32 = arith.constant 0 : i32
    %c0_i32_0 = arith.constant 0 : i32
    %c0_i32_1 = arith.constant 0 : i32
    return %c0_i32, %c0_i32_0 : i32, i32
  }
  func.func @transform_13(%arg0: i32) -> (i32, i32) {
    %c0_i32 = arith.constant 0 : i32
    %c0_i32_0 = arith.constant 0 : i32
    return %arg0, %c0_i32 : i32, i32
  }
}

</mosaic_0001>

<bundles_post_ra>
// kernel: tpu_custom_call.1
= control target key start
LH: loop header
LB: loop body
LE: loop exit
PB: predicated region body
PF: predicated region fallthrough
CT: control target
= control target key end

     0   :  { %18 = vsyncpa [#allocation3], 0  ;;  %s2234_s28 = smov [#allocation2]   ;;  %s2235_s30 = smov 128   ;;  %s2919_s0 = inlined_call_operand.vmem [shape: bf16[48,8], index: 0, kind: input, shape index: {}]   ;;  %s2920_s1 = inlined_call_operand.vmem [shape: bf16[48,4], index: 1, kind: input, shape index: {}]   ;;  %s2921_s2 = inlined_call_operand.vmem [shape: bf16[48,4], index: 2, kind: input, shape index: {}]   ;;  %s2922_s3 = inlined_call_operand.vmem [shape: bf16[8,512], index: 3, kind: input, shape index: {}]   ;;  %s2923_s4 = inlined_call_operand.vmem [shape: bf16[4,512], index: 4, kind: input, shape index: {}]   ;;  %s2924_s5 = inlined_call_operand.vmem [shape: bf16[4,512], index: 5, kind: input, shape index: {}]   ;;  %s2925_s6 = inlined_call_operand.vmem [shape: f32[1,512], index: 6, kind: input, shape index: {}]   ;;  %s2926_s7 = inlined_call_operand.vmem [shape: bf16[256,256], index: 7, kind: input, shape index: {}]   ;;  %s2927_s8 = inlined_call_operand.vmem [shape: f32[1,256], index: 8, kind: input, shape index: {}]   ;;  %s2928_s9 = inlined_call_operand.hbm [shape: bf16[256,256], index: 9, kind: input, shape index: {}]   ;;  %s2929_s10 = inlined_call_operand.vmem [shape: f32[1,256], index: 10, kind: input, shape index: {}]   ;;  %s2930_s11 = inlined_call_operand.vmem [shape: bf16[512,2], index: 11, kind: input, shape index: {}]   ;;  %s2931_s12 = inlined_call_operand.vmem [shape: f32[1,2], index: 12, kind: input, shape index: {}]   ;;  %s2932_s13 = inlined_call_operand.vmem [shape: f32[48,2], index: 13, kind: output, shape index: {}]  }
   0x1   :  { %s41_s27 = sshll.u32 %s2928_s9, 4  ;;  %s43_s29 = sshll.u32 %s2234_s28, 4  ;;  %s42_s27 = int_to_ptr.hbm [resolvable:$true] %s41_s27  ;;  %s44_s29 = int_to_ptr.vmem [resolvable:$true] %s43_s29 }
   0x2   :  { %s2236_s14 = smov 8  }
   0x3   :  { %49 = dma.hbm_to_vmem [thread:$0]  %s42_s27, 4096, %s44_s29, [#allocation3], %s2235_s30, %s2235_s30, %s2236_s14  }
   0x4   :  { %2232 = dma.done.wait [#allocation3], 4096  }
   0x5   :  { %2233 = vsyncadd [#allocation3], 4294963200  ;;  %v75_v0 = vld [vmem:[%s2923_s4] sm:$0xff]  ;;  %vm247_vm0 = vcmask 1043456   ;;  %vm107_vm1 = vcmask 1041408   ;;  %vm97_vm2 = vcmask 31744  }
   0x6   :  { %92 = vst [vmem:[#allocation1] ss:$4 sm:$0xff] %v75_v0  ;;  %v67_v1 = vld [vmem:[%s2922_s3] sm:$0xff]  ;;  %v68_v18 = vld [vmem:[%s2922_s3 + $0x8] sm:$0xff]  ;;  %v2104_v30 = vld [vmem:[%s2920_s1 + $0x10] sm:$0xff]  ;;  %vm237_vm3 = vcmask 64512  }
   0x7   :  { %v229_v2 = vunpack.c.l.b16 %v67_v1  ;;  %v230_v3 = vunpack.c.h.b16 %v67_v1  ;;  %v362_v6 = vld [vmem:[%s2924_s5] sm:$0xff]  ;;  %v231_v19 = vunpack.c.l.b16 %v68_v18  ;;  %v232_v20 = vunpack.c.h.b16 %v68_v18  ;;  %v2103_v25 = vld [vmem:[%s2920_s1 + $0x8] sm:$0xff]  ;;  %v2101_v37 = vld [vmem:[%s2919_s0 + $0x10] sm:$0xff] }
   0x8   :  { %v2102_v7 = vld [vmem:[%s2920_s1] sm:$0xff]  ;;  %v2100_v36 = vld [vmem:[%s2919_s0 + $0x8] sm:$0xff]  ;;  %v2107_v40 = vld [vmem:[%s2921_s2 + $0x10] sm:$0xff]  ;;  %vm1631_vm4 = vcmask 15360  }
   0x9   :  { %v233_v4 = vpack.c.b16 %v229_v2, %v229_v2  ;;  %v234_v5 = vpack.c.b16 %v230_v3, %v230_v3  ;;  %v235_v21 = vpack.c.b16 %v231_v19, %v231_v19  ;;  %v236_v22 = vpack.c.b16 %v232_v20, %v232_v20  ;;  %v2099_v31 = vld [vmem:[%s2919_s0] sm:$0xff]  ;;  %v2106_v39 = vld [vmem:[%s2921_s2 + $0x8] sm:$0xff]  ;;  %v2122_v57 = vld [vmem:[%s2926_s7 + $0x74] sm:$0xf] }
   0xa   :  { %v2105_v38 = vld [vmem:[%s2921_s2] sm:$0xff]  ;;  %v1775_v58 = vld [vmem:[%s2926_s7 + $0x78] sm:$0xf0]  ;;  %v2138_v59 = vld [vmem:[%s2926_s7 + $0xf4] sm:$0xf] }
   0xb   :  { %v249_v8 = vsel %vm247_vm0, %v233_v4, 0  ;;  %v252_v14 = vsel %vm247_vm0, %v234_v5, 0  ;;  %v255_v23 = vsel %vm247_vm0, %v235_v21, 0  ;;  %v258_v24 = vsel %vm247_vm0, %v236_v22, 0  ;;  %v1839_v61 = vld [vmem:[%s2926_s7 + $0xf8] sm:$0xf0] }
   0xc   :  { %v1778_v60 = vor.u32 %v2122_v57, %v1775_v58  ;;  %v1842_v63 = vor.u32 %v2138_v59, %v1839_v61  ;;  %v1773_v3 = vld [vmem:[%s2926_s7 + $0x70] sm:$0xf]  ;;  %v2123_v4 = vld [vmem:[%s2926_s7 + $0x74] sm:$0xf0]  ;;  %v2120_v5 = vld [vmem:[%s2926_s7 + $0x64] sm:$0xf] }
   0xd   :  { %v93_v9 = vld.sshfl [vmem:[#allocation1] sm:$0xff pattern:$0x73625140]  ;;  %v94_v10 = vld.sshfl [vmem:[#allocation1 + $0x8] sm:$0xff pattern:$0x73625140] }
   0xe   :  { %v108_v11 = vsel %vm107_vm1, %v93_v9, 0  ;;  %v110_v12 = vsel %vm107_vm1, %v94_v10, 0  ;;  %v95_v13 = vld.sshfl [vmem:[#allocation1 + $0x10] sm:$0xff pattern:$0x73625140] }
   0xf   :  { %123 = vmatpush.bf16.msra.mxu0 %v108_v11  ;;  %147 = vmatpush.bf16.msra.mxu1 %v110_v12  ;;  %v112_v15 = vsel %vm107_vm1, %v95_v13, 0  ;;  %v96_v16 = vld.sshfl [vmem:[#allocation1 + $0x18] sm:$0xff pattern:$0x73625140]  ;;  %v2136_v12 = vld [vmem:[%s2926_s7 + $0xe4] sm:$0xf] }
  0x10   :  { %171 = vmatpush.bf16.msra.mxu2 %v112_v15  ;;  %v114_v17 = vsel %vm107_vm1, %v96_v16, 0  ;;  %379 = vst [vmem:[#allocation1] ss:$4 sm:$0xff] %v362_v6  ;;  %v1774_v6 = vor.u32 %v2123_v4, %v1773_v3  ;;  %v2139_v9 = vld [vmem:[%s2926_s7 + $0xf4] sm:$0xf0] }
  0x11   :  { %195 = vmatpush.bf16.msra.mxu3 %v114_v17  ;;  %v1831_v13 = vld [vmem:[%s2926_s7 + $0xe8] sm:$0xf0]  ;;  %v2121_v16 = vld [vmem:[%s2926_s7 + $0x64] sm:$0xf0]  ;;  %v2118_v17 = vld [vmem:[%s2926_s7 + $0x54] sm:$0xf] }
  0x12   :  { %1655 = vmatmul.msk.bf16.vlgmr.msra.gmra.mxu0 %vm97_vm2, %v2102_v7  ;;  %1658 = vmatmul.msk.bf16.vlgmr.msra.gmra.mxu1 %vm97_vm2, %v2102_v7  ;;  %v1834_v15 = vor.u32 %v2136_v12, %v1831_v13  ;;  %v1759_v18 = vld [vmem:[%s2926_s7 + $0x58] sm:$0xf0]  ;;  %v1749_v3 = vld [vmem:[%s2926_s7 + $0x40] sm:$0xf]  ;;  %v2117_v4 = vld [vmem:[%s2926_s7 + $0x44] sm:$0xf0] }
  0x13   :  { %267 = vmatpush.bf16.msrb.mxu0 %v249_v8  ;;  %291 = vmatpush.bf16.msrb.mxu1 %v252_v14  ;;  %v1837_v8 = vld [vmem:[%s2926_s7 + $0xf0] sm:$0xf]  ;;  %v1765_v14 = vld [vmem:[%s2926_s7 + $0x60] sm:$0xf]  ;;  %v1762_v20 = vor.u32 %v2118_v17, %v1759_v18  ;;  %v2130_v12 = vld [vmem:[%s2926_s7 + $0xb4] sm:$0xf] }
  0x14   :  { %1661 = vmatmul.msk.bf16.vlgmr.msra.gmra.mxu2 %vm97_vm2, %v2102_v7  ;;  %1664 = vmatmul.msk.bf16.vlgmr.msra.gmra.mxu3 %vm97_vm2, %v2102_v7  ;;  %v1767_v7 = vld [vmem:[%s2926_s7 + $0x68] sm:$0xf0]  ;;  %v1838_v11 = vor.u32 %v2139_v9, %v1837_v8  ;;  %v1766_v19 = vor.u32 %v2121_v16, %v1765_v14  ;;  %v1813_v8 = vld [vmem:[%s2926_s7 + $0xc0] sm:$0xf]  ;;  %v2133_v9 = vld [vmem:[%s2926_s7 + $0xc4] sm:$0xf0] }
  0x15   :  { %315 = vmatpush.bf16.msrb.mxu2 %v255_v23  ;;  %339 = vmatpush.bf16.msrb.mxu3 %v258_v24  ;;  %v1770_v10 = vor.u32 %v2120_v5, %v1767_v7  ;;  %v2114_v5 = vld [vmem:[%s2926_s7 + $0x34] sm:$0xf]  ;;  %v1743_v7 = vld [vmem:[%s2926_s7 + $0x38] sm:$0xf0]  ;;  %v1741_v17 = vld [vmem:[%s2926_s7 + $0x30] sm:$0xf] }
  0x16   :  { %v1807_v13 = vld [vmem:[%s2926_s7 + $0xb8] sm:$0xf0]  ;;  %v2115_v18 = vld [vmem:[%s2926_s7 + $0x34] sm:$0xf0] }
  0x17   :  { %v380_v26 = vld.sshfl [vmem:[#allocation1] sm:$0xff pattern:$0x73625140]  ;;  %v381_v27 = vld.sshfl [vmem:[#allocation1 + $0x8] sm:$0xff pattern:$0x73625140]  ;;  %v1810_v14 = vor.u32 %v2130_v12, %v1807_v13 }
  0x18   :  { %v393_v28 = vsel %vm107_vm1, %v380_v26, 0  ;;  %v395_v29 = vsel %vm107_vm1, %v381_v27, 0  ;;  %v382_v32 = vld.sshfl [vmem:[#allocation1 + $0x10] sm:$0xff pattern:$0x73625140] }
  0x19   :  { %408 = vmatpush.bf16.msra.mxu0 %v393_v28  ;;  %432 = vmatpush.bf16.msra.mxu1 %v395_v29  ;;  %v383_v33 = vld.sshfl [vmem:[#allocation1 + $0x18] sm:$0xff pattern:$0x73625140]  ;;  %v397_v34 = vsel %vm107_vm1, %v382_v32, 0  ;;  %v2137_v26 = vld [vmem:[%s2926_s7 + $0xe4] sm:$0xf0] }
  0x1a   :  { %v399_v35 = vsel %vm107_vm1, %v383_v33, 0  ;;  %456 = vmatpush.bf16.msra.mxu2 %v397_v34  ;;  %v2134_v27 = vld [vmem:[%s2926_s7 + $0xd4] sm:$0xf]  ;;  %v1823_v29 = vld [vmem:[%s2926_s7 + $0xd8] sm:$0xf0] }
  0x1b   :  { %480 = vmatpush.bf16.msra.mxu3 %v399_v35  ;;  %v1826_v32 = vor.u32 %v2134_v27, %v1823_v29  ;;  %v2116_v34 = vld [vmem:[%s2926_s7 + $0x44] sm:$0xf]  ;;  %v1751_v35 = vld [vmem:[%s2926_s7 + $0x48] sm:$0xf0]  ;;  %v1805_v27 = vld [vmem:[%s2926_s7 + $0xb0] sm:$0xf] }
  0x1c   :  { %v2127_v13 = vld [vmem:[%s2926_s7 + $0x94] sm:$0xf0] }
  0x22   :  { %1656 = vmatmul.msk.bf16.gmra.mxu0 %vm97_vm2, %v2103_v25  ;;  %1659 = vmatmul.msk.bf16.gmra.mxu1 %vm97_vm2, %v2103_v25 }
  0x24   :  { %1662 = vmatmul.msk.bf16.gmra.mxu2 %vm97_vm2, %v2103_v25  ;;  %1665 = vmatmul.msk.bf16.gmra.mxu3 %vm97_vm2, %v2103_v25  ;;  %v1829_v25 = vld [vmem:[%s2926_s7 + $0xe0] sm:$0xf] }
  0x25   :  { %v1830_v28 = vor.u32 %v2137_v26, %v1829_v25  ;;  %v1742_v25 = vor.u32 %v2115_v18, %v1741_v17  ;;  %v1735_v26 = vld [vmem:[%s2926_s7 + $0x28] sm:$0xf0] }
  0x32   :  { %1657 = vmatmul.msk.bf16.gmra.mxu0 %vm97_vm2, %v2104_v30  ;;  %1660 = vmatmul.msk.bf16.gmra.mxu1 %vm97_vm2, %v2104_v30 }
  0x34   :  { %1663 = vmatmul.msk.bf16.gmra.mxu2 %vm97_vm2, %v2104_v30  ;;  %1666 = vmatmul.msk.bf16.gmra.mxu3 %vm97_vm2, %v2104_v30  ;;  %v1757_v30 = vld [vmem:[%s2926_s7 + $0x50] sm:$0xf] }
  0x42   :  { %1679 = vmatmul.msk.bf16.vlgmr.msrb.gmra.mxu0 %vm237_vm3, %v2099_v31  ;;  %1682 = vmatmul.msk.bf16.vlgmr.msrb.gmra.mxu1 %vm237_vm3, %v2099_v31 }
  0x43   :  { %789 = vmatpush.bf16.msrb.mxu0 %v1774_v6  ;;  %813 = vmatpush.bf16.msrb.mxu1 %v1838_v11  ;;  %v1750_v6 = vor.u32 %v2117_v4, %v1749_v3  ;;  %v1814_v11 = vor.u32 %v2133_v9, %v1813_v8  ;;  %v1725_v9 = vld [vmem:[%s2926_s7 + $0x10] sm:$0xf] }
  0x44   :  { %1685 = vmatmul.msk.bf16.vlgmr.msrb.gmra.mxu2 %vm237_vm3, %v2099_v31  ;;  %1688 = vmatmul.msk.bf16.vlgmr.msrb.gmra.mxu3 %vm237_vm3, %v2099_v31  ;;  %v2119_v31 = vld [vmem:[%s2926_s7 + $0x54] sm:$0xf0] }
  0x45   :  { %837 = vmatpush.bf16.msrb.mxu2 %v1778_v60  ;;  %861 = vmatpush.bf16.msrb.mxu3 %v1842_v63  ;;  %v1758_v33 = vor.u32 %v2119_v31, %v1757_v30  ;;  %v2131_v30 = vld [vmem:[%s2926_s7 + $0xb4] sm:$0xf0] }
  0x46   :  { %v1806_v31 = vor.u32 %v2131_v30, %v1805_v27  ;;  %v1717_v30 = vld [vmem:[%s2926_s7] sm:$0xf] }
  0x47   :  { %790 = vmatpush.bf16.msrb.mxu0 %v1766_v19  ;;  %814 = vmatpush.bf16.msrb.mxu1 %v1830_v28  ;;  %v2112_v19 = vld [vmem:[%s2926_s7 + $0x24] sm:$0xf] }
  0x48   :  { %v1738_v29 = vor.u32 %v2112_v19, %v1735_v26  ;;  %v2108_v19 = vld [vmem:[%s2926_s7 + $0x4] sm:$0xf] }
  0x49   :  { %838 = vmatpush.bf16.msrb.mxu2 %v1770_v10  ;;  %862 = vmatpush.bf16.msrb.mxu3 %v1834_v15  ;;  %v1746_v10 = vor.u32 %v2114_v5, %v1743_v7  ;;  %v1791_v7 = vld [vmem:[%s2926_s7 + $0x98] sm:$0xf0]  ;;  %v2124_v26 = vld [vmem:[%s2926_s7 + $0x84] sm:$0xf] }
  0x4b   :  { %791 = vmatpush.bf16.msrb.mxu0 %v1758_v33  ;;  %v1799_v33 = vld [vmem:[%s2926_s7 + $0xa8] sm:$0xf0] }
  0x4d   :  { %839 = vmatpush.bf16.msrb.mxu2 %v1762_v20  ;;  %863 = vmatpush.bf16.msrb.mxu3 %v1826_v32  ;;  %v2128_v32 = vld [vmem:[%s2926_s7 + $0xa4] sm:$0xf] }
  0x4f   :  { %792 = vmatpush.bf16.msrb.mxu0 %v1750_v6  ;;  %v2126_v6 = vld [vmem:[%s2926_s7 + $0x94] sm:$0xf] }
  0x50   :  { %v1794_v8 = vor.u32 %v2126_v6, %v1791_v7 }
  0x52   :  { %1680 = vmatmul.msk.bf16.gmra.mxu0 %vm237_vm3, %v2100_v36  ;;  %1683 = vmatmul.msk.bf16.gmra.mxu1 %vm237_vm3, %v2100_v36 }
  0x53   :  { %793 = vmatpush.bf16.msrb.mxu0 %v1742_v25  ;;  %v1719_v25 = vld [vmem:[%s2926_s7 + $0x8] sm:$0xf0] }
  0x54   :  { %1686 = vmatmul.msk.bf16.gmra.mxu2 %vm237_vm3, %v2100_v36  ;;  %1689 = vmatmul.msk.bf16.gmra.mxu3 %vm237_vm3, %v2100_v36  ;;  %v1821_v36 = vld [vmem:[%s2926_s7 + $0xd0] sm:$0xf]  ;;  %v1722_v27 = vor.u32 %v2108_v19, %v1719_v25  ;;  %v1895_v19 = vld [vmem:[#allocation2 + $0x68] sm:$0xf0]  ;;  %v1965_v25 = vld [vmem:[#allocation2 + $0xf0] sm:$0xf] }
  0x62   :  { %1681 = vmatmul.msk.bf16.gmra.mxu0 %vm237_vm3, %v2101_v37  ;;  %1684 = vmatmul.msk.bf16.gmra.mxu1 %vm237_vm3, %v2101_v37 }
  0x64   :  { %1687 = vmatmul.msk.bf16.gmra.mxu2 %vm237_vm3, %v2101_v37  ;;  %1690 = vmatmul.msk.bf16.gmra.mxu3 %vm237_vm3, %v2101_v37  ;;  %v1754_v37 = vor.u32 %v2116_v34, %v1751_v35  ;;  %v1733_v34 = vld [vmem:[%s2926_s7 + $0x20] sm:$0xf]  ;;  %v1802_v35 = vor.u32 %v2128_v32, %v1799_v33 }
  0x66   :  { %840 = vmatpush.bf16.msrb.mxu2 %v1754_v37  ;;  %v2110_v37 = vld [vmem:[%s2926_s7 + $0x14] sm:$0xf] }
  0x6a   :  { %841 = vmatpush.bf16.msrb.mxu2 %v1746_v10  ;;  %v2111_v10 = vld [vmem:[%s2926_s7 + $0x14] sm:$0xf0] }
  0x6b   :  { %v1726_v12 = vor.u32 %v2111_v10, %v1725_v9 }
  0x6e   :  { %842 = vmatpush.bf16.msrb.mxu2 %v1738_v29  ;;  %v1783_v29 = vld [vmem:[%s2926_s7 + $0x88] sm:$0xf0] }
  0x6f   :  { %v1786_v32 = vor.u32 %v2124_v26, %v1783_v29  ;;  %v2171_v26 = vld [vmem:[#allocation2 + $0xf4] sm:$0xf0] }
  0x70   :  { %v1966_v29 = vor.u32 %v2171_v26, %v1965_v25  ;;  %v1957_v25 = vld [vmem:[#allocation2 + $0xe0] sm:$0xf]  ;;  %v2169_v26 = vld [vmem:[#allocation2 + $0xe4] sm:$0xf0] }
  0x72   :  { %1703 = vmatmul.msk.bf16.vlgmr.msra.gmra.mxu0 %vm97_vm2, %v2105_v38  ;;  %1706 = vmatmul.msk.bf16.vlgmr.msra.gmra.mxu1 %vm97_vm2, %v2105_v38 }
  0x74   :  { %1709 = vmatmul.msk.bf16.vlgmr.msra.gmra.mxu2 %vm97_vm2, %v2105_v38  ;;  %1712 = vmatmul.msk.bf16.vlgmr.msra.gmra.mxu3 %vm97_vm2, %v2105_v38  ;;  %v2135_v38 = vld [vmem:[%s2926_s7 + $0xd4] sm:$0xf0] }
  0x75   :  { %v1822_v57 = vor.u32 %v2135_v38, %v1821_v36  ;;  %v2113_v36 = vld [vmem:[%s2926_s7 + $0x24] sm:$0xf0]  ;;  %v1727_v38 = vld [vmem:[%s2926_s7 + $0x18] sm:$0xf0] }
  0x77   :  { %815 = vmatpush.bf16.msrb.mxu1 %v1822_v57  ;;  %v1797_v57 = vld [vmem:[%s2926_s7 + $0xa0] sm:$0xf] }
  0x7b   :  { %816 = vmatpush.bf16.msrb.mxu1 %v1814_v11  ;;  %v1789_v11 = vld [vmem:[%s2926_s7 + $0x90] sm:$0xf] }
  0x7c   :  { %v1790_v17 = vor.u32 %v2127_v13, %v1789_v11  ;;  %v1901_v11 = vld [vmem:[#allocation2 + $0x70] sm:$0xf]  ;;  %v2152_v13 = vld [vmem:[#allocation2 + $0x64] sm:$0xf] }
  0x7f   :  { %817 = vmatpush.bf16.msrb.mxu1 %v1806_v31  ;;  %v2109_v31 = vld [vmem:[%s2926_s7 + $0x4] sm:$0xf0] }
  0x80   :  { %v1718_v33 = vor.u32 %v2109_v31, %v1717_v30  ;;  %v2168_v30 = vld [vmem:[#allocation2 + $0xe4] sm:$0xf]  ;;  %v1959_v31 = vld [vmem:[#allocation2 + $0xe8] sm:$0xf0] }
  0x82   :  { %1704 = vmatmul.msk.bf16.gmra.mxu0 %vm97_vm2, %v2106_v39  ;;  %1707 = vmatmul.msk.bf16.gmra.mxu1 %vm97_vm2, %v2106_v39 }
  0x84   :  { %1710 = vmatmul.msk.bf16.gmra.mxu2 %vm97_vm2, %v2106_v39  ;;  %1713 = vmatmul.msk.bf16.gmra.mxu3 %vm97_vm2, %v2106_v39  ;;  %v2132_v39 = vld [vmem:[%s2926_s7 + $0xc4] sm:$0xf] }
  0x8f   :  { %v2393_v41 = vpop.f32.mrf.mxu0  ;;  %v2395_v42 = vpop.f32.mrf.mxu1 }
  0x92   :  { %1705 = vmatmul.msk.bf16.gmra.mxu0 %vm97_vm2, %v2107_v40  ;;  %1708 = vmatmul.msk.bf16.gmra.mxu1 %vm97_vm2, %v2107_v40 }
  0x94   :  { %1711 = vmatmul.msk.bf16.gmra.mxu2 %vm97_vm2, %v2107_v40  ;;  %1714 = vmatmul.msk.bf16.gmra.mxu3 %vm97_vm2, %v2107_v40  ;;  %v1815_v40 = vld [vmem:[%s2926_s7 + $0xc8] sm:$0xf0] }
  0x95   :  { %v1818_v58 = vor.u32 %v2132_v39, %v1815_v40  ;;  %v1734_v39 = vor.u32 %v2113_v36, %v1733_v34  ;;  %v1730_v40 = vor.u32 %v2110_v37, %v1727_v38  ;;  %v1781_v34 = vld [vmem:[%s2926_s7 + $0x80] sm:$0xf] }
  0x97   :  { %v2401_v43 = vpop.f32.mrf.mxu2  ;;  %v2403_v44 = vpop.f32.mrf.mxu3  ;;  %864 = vmatpush.bf16.msrb.mxu3 %v1818_v58  ;;  %v2129_v58 = vld [vmem:[%s2926_s7 + $0xa4] sm:$0xf0]  ;;  %794 = vmatpush.bf16.msrb.mxu0 %v1734_v39 }
  0x98   :  { %v2405_v45 = vpop.f32.mrf.mxu0  ;;  %v2407_v46 = vpop.f32.mrf.mxu1  ;;  %v1798_v4 = vor.u32 %v2129_v58, %v1797_v57  ;;  %843 = vmatpush.bf16.msrb.mxu2 %v1730_v40  ;;  %v2154_v57 = vld [vmem:[#allocation2 + $0x74] sm:$0xf]  ;;  %v1903_v58 = vld [vmem:[#allocation2 + $0x78] sm:$0xf0] }
  0x99   :  { %v1906_v7 = vor.u32 %v2154_v57, %v1903_v58  ;;  %v2150_v57 = vld [vmem:[#allocation2 + $0x54] sm:$0xf]  ;;  %v1887_v58 = vld [vmem:[#allocation2 + $0x58] sm:$0xf0] }
  0x9a   :  { %818 = vmatpush.bf16.msrb.mxu1 %v1798_v4  ;;  %v2170_v4 = vld [vmem:[#allocation2 + $0xf4] sm:$0xf] }
  0x9b   :  { %865 = vmatpush.bf16.msrb.mxu3 %v1810_v14  ;;  %795 = vmatpush.bf16.msrb.mxu0 %v1726_v12  ;;  %v2155_v12 = vld [vmem:[#allocation2 + $0x74] sm:$0xf0] }
  0x9c   :  { %844 = vmatpush.bf16.msrb.mxu2 %v1722_v27  ;;  %v1898_v27 = vor.u32 %v2152_v13, %v1895_v19 }
  0x9e   :  { %819 = vmatpush.bf16.msrb.mxu1 %v1790_v17  ;;  %v1902_v17 = vor.u32 %v2155_v12, %v1901_v11  ;;  %v1890_v11 = vor.u32 %v2150_v57, %v1887_v58  ;;  %v1879_v58 = vld [vmem:[#allocation2 + $0x48] sm:$0xf0] }
  0x9f   :  { %v2409_v47 = vpop.f32.mrf.mxu2  ;;  %v2413_v49 = vpop.f32.mrf.mxu3  ;;  %866 = vmatpush.bf16.msrb.mxu3 %v1802_v35  ;;  %v2125_v35 = vld [vmem:[%s2926_s7 + $0x84] sm:$0xf0]  ;;  %796 = vmatpush.bf16.msrb.mxu0 %v1718_v33 }
  0xa0   :  { %v2411_v48 = vpop.f32.mrf.mxu0  ;;  %v2415_v50 = vpop.f32.mrf.mxu1  ;;  %v1782_v37 = vor.u32 %v2125_v35, %v1781_v34  ;;  %1143 = vmatpush.bf16.msra.mxu2 %v1906_v7  ;;  %v1962_v35 = vor.u32 %v2168_v30, %v1959_v31  ;;  %v1958_v30 = vor.u32 %v2169_v26, %v1957_v25  ;;  %v2166_v31 = vld [vmem:[#allocation2 + $0xd4] sm:$0xf]  ;;  %v1943_v26 = vld [vmem:[#allocation2 + $0xc8] sm:$0xf0] }
  0xa2   :  { %820 = vmatpush.bf16.msrb.mxu1 %v1782_v37  ;;  %v2153_v37 = vld [vmem:[#allocation2 + $0x64] sm:$0xf0] }
  0xa3   :  { %867 = vmatpush.bf16.msrb.mxu3 %v1794_v8  ;;  %v1967_v8 = vld [vmem:[#allocation2 + $0xf8] sm:$0xf0]  ;;  %1095 = vmatpush.bf16.msra.mxu0 %v1902_v17 }
  0xa4   :  { %v1970_v10 = vor.u32 %v2170_v4, %v1967_v8  ;;  %1144 = vmatpush.bf16.msra.mxu2 %v1898_v27 }
  0xa6   :  { %1119 = vmatpush.bf16.msra.mxu1 %v1966_v29 }
  0xa7   :  { %v2421_v53 = vpop.f32.mrf.mxu2  ;;  %v2423_v54 = vpop.f32.mrf.mxu3  ;;  %868 = vmatpush.bf16.msrb.mxu3 %v1786_v32  ;;  %v1893_v32 = vld [vmem:[#allocation2 + $0x60] sm:$0xf] }
  0xa8   :  { %v2417_v51 = vpop.f32.mrf.mxu0  ;;  %v2419_v52 = vpop.f32.mrf.mxu1  ;;  %v1894_v8 = vor.u32 %v2153_v37, %v1893_v32  ;;  %1145 = vmatpush.bf16.msra.mxu2 %v1890_v11  ;;  %v1951_v32 = vld [vmem:[#allocation2 + $0xd8] sm:$0xf0] }
  0xaa   :  { %1096 = vmatpush.bf16.msra.mxu0 %v1894_v8  ;;  %1120 = vmatpush.bf16.msra.mxu1 %v1958_v30  ;;  %v2167_v8 = vld [vmem:[#allocation2 + $0xd4] sm:$0xf0] }
  0xab   :  { %1167 = vmatpush.bf16.msra.mxu3 %v1970_v10  ;;  %v2680_v10 = vld [vmem:[%s2925_s6] sm:$0xf] }
  0xac   :  { %v2687_v19 = vperm.slane %v2680_v10, 0  ;;  %v2690_v29 = vperm.slane %v2680_v10, 1 }
  0xaf   :  { %v2441_v62 = vpop.f32.mrf.mxu2  ;;  %v2443_v0 = vpop.f32.mrf.mxu3  ;;  %1168 = vmatpush.bf16.msra.mxu3 %v1962_v35 }
  0xb0   :  { %v2425_v55 = vpop.f32.mrf.mxu0  ;;  %v2427_v56 = vpop.f32.mrf.mxu1 }
  0xb7   :  { %v2485_v21 = vpop.f32.mrf.mxu2  ;;  %v2487_v22 = vpop.f32.mrf.mxu3 }
  0xb8   :  { %v2445_v1 = vpop.f32.mrf.mxu0  ;;  %v2447_v2 = vpop.f32.mrf.mxu1 }
  0xbf   :  { %v2529_v59 = vpop.f32.mrf.mxu2  ;;  %v2533_v61 = vpop.f32.mrf.mxu3 }
  0xc0   :  { %v2489_v23 = vpop.f32.mrf.mxu0  ;;  %v2491_v24 = vpop.f32.mrf.mxu1 }
  0xc1   :  { %v270_v12 = vadd.f32 %v2489_v23, %v2393_v41  ;;  %v294_v13 = vadd.f32 %v2491_v24, %v2395_v42  ;;  %v1954_v23 = vor.u32 %v2166_v31, %v1951_v32  ;;  %v1885_v42 = vld [vmem:[#allocation2 + $0x50] sm:$0xf]  ;;  %v2151_v24 = vld [vmem:[#allocation2 + $0x54] sm:$0xf0] }
  0xc2   :  { %v1886_v57 = vor.u32 %v2151_v24, %v1885_v42  ;;  %v1877_v24 = vld [vmem:[#allocation2 + $0x40] sm:$0xf] }
  0xc3   :  { %1169 = vmatpush.bf16.msra.mxu3 %v1954_v23 }
  0xc4   :  { %1097 = vmatpush.bf16.msra.mxu0 %v1886_v57 }
  0xc7   :  { %v2574_v20 = vpop.f32.mrf.mxu2  ;;  %v2582_v28 = vpop.f32.mrf.mxu3 }
  0xc8   :  { %v2531_v60 = vpop.f32.mrf.mxu0  ;;  %v2535_v63 = vpop.f32.mrf.mxu1 }
  0xc9   :  { %v272_v41 = vadd.f32 %v2531_v60, %v2405_v45  ;;  %v296_v35 = vadd.f32 %v2535_v63, %v2407_v46  ;;  %v2164_v60 = vld [vmem:[#allocation2 + $0xc4] sm:$0xf] }
  0xca   :  { %v1946_v63 = vor.u32 %v2164_v60, %v1943_v26  ;;  %v2165_v60 = vld [vmem:[#allocation2 + $0xc4] sm:$0xf0]  ;;  %v2162_v26 = vld [vmem:[#allocation2 + $0xb4] sm:$0xf] }
  0xcc   :  { %1170 = vmatpush.bf16.msra.mxu3 %v1946_v63 }
  0xcf   :  { %v2633_v14 = vpop.f32.mrf.mxu2  ;;  %v2635_v18 = vpop.f32.mrf.mxu3 }
  0xd0   :  { %v2561_v15 = vpop.f32.mrf.mxu0  ;;  %v2563_v16 = vpop.f32.mrf.mxu1 }
  0xd7   :  { %v2665_v39 = vpop.f32.mrf.mxu2  ;;  %v2667_v40 = vpop.f32.mrf.mxu3 }
  0xd8   :  { %v2611_v3 = vpop.f32.mrf.mxu0  ;;  %v2613_v5 = vpop.f32.mrf.mxu1 }
  0xdf   :  { %v2673_v33 = vpop.f32.mrf.mxu2  ;;  %v2675_v4 = vpop.f32.mrf.mxu3 }
  0xe0   :  { %v2661_v36 = vpop.f32.mrf.mxu0  ;;  %v2663_v38 = vpop.f32.mrf.mxu1 }
  0xe7   :  { %v2697_v31 = vpop.f32.mrf.mxu2  ;;  %v2700_v30 = vpop.f32.mrf.mxu3 }
  0xe8   :  { %v2669_v6 = vpop.f32.mrf.mxu0  ;;  %v2671_v9 = vpop.f32.mrf.mxu1 }
  0xf0   :  { %v410_v34 = vpop.f32.mrf.mxu0  ;;  %v434_v7 = vpop.f32.mrf.mxu1 }
  0xf1   :  { %v497_v17 = vadd.f32 %v410_v34, %v270_v12  ;;  %v498_v27 = vadd.f32 %v434_v7, %v294_v13  ;;  %v2148_v34 = vld [vmem:[#allocation2 + $0x44] sm:$0xf]  ;;  %v1949_v7 = vld [vmem:[#allocation2 + $0xd0] sm:$0xf] }
  0xf2   :  { %v1882_v25 = vor.u32 %v2148_v34, %v1879_v58  ;;  %v1950_v45 = vor.u32 %v2167_v8, %v1949_v7  ;;  %v2149_v34 = vld [vmem:[#allocation2 + $0x44] sm:$0xf0] }
  0xf3   :  { %v531_v11 = vadd.f32 %v2687_v19, %v497_v17  ;;  %v532_v32 = vadd.f32 %v2690_v29, %v498_v27  ;;  %v1878_v7 = vor.u32 %v2149_v34, %v1877_v24  ;;  %v2146_v27 = vld [vmem:[#allocation2 + $0x34] sm:$0xf] }
  0xf4   :  { %1146 = vmatpush.bf16.msra.mxu2 %v1882_v25  ;;  %1121 = vmatpush.bf16.msra.mxu1 %v1950_v45  ;;  %v1935_v45 = vld [vmem:[#allocation2 + $0xb8] sm:$0xf0] }
  0xf5   :  { %1098 = vmatpush.bf16.msra.mxu0 %v1878_v7  ;;  %v1938_v63 = vor.u32 %v2162_v26, %v1935_v45  ;;  %v2710_v7 = vpop.f32.mrf.mxu3  ;;  %v2160_v26 = vld [vmem:[#allocation2 + $0xa4] sm:$0xf] }
  0xf7   :  { %1171 = vmatpush.bf16.msra.mxu3 %v1938_v63  ;;  %v1855_v63 = vld [vmem:[#allocation2 + $0x18] sm:$0xf0] }
  0xf8   :  { %v412_v37 = vpop.f32.mrf.mxu0  ;;  %v436_v13 = vpop.f32.mrf.mxu1 }
  0xf9   :  { %v501_v12 = vadd.f32 %v412_v37, %v272_v41  ;;  %v502_v46 = vadd.f32 %v436_v13, %v296_v35  ;;  %v555_v41 = vmax.f32 %v531_v11, 0.0  ;;  %v556_v37 = vmax.f32 %v532_v32, 0.0  ;;  %v1871_v35 = vld [vmem:[#allocation2 + $0x38] sm:$0xf0]  ;;  %v1941_v13 = vld [vmem:[#allocation2 + $0xc0] sm:$0xf] }
  0xfa   :  { %v1874_v8 = vor.u32 %v2146_v27, %v1871_v35  ;;  %v2147_v32 = vld [vmem:[#allocation2 + $0x34] sm:$0xf0]  ;;  %v2144_v35 = vld [vmem:[#allocation2 + $0x24] sm:$0xf] }
  0xfb   :  { %v535_v42 = vadd.f32 %v2687_v19, %v501_v12  ;;  %v536_v17 = vadd.f32 %v2690_v29, %v502_v46  ;;  %v1942_v46 = vor.u32 %v2165_v60, %v1941_v13 }
  0xfc   :  { %1147 = vmatpush.bf16.msra.mxu2 %v1874_v8  ;;  %v1861_v8 = vld [vmem:[#allocation2 + $0x20] sm:$0xf] }
  0xfd   :  { %v559_v23 = vmax.f32 %v535_v42, 0.0  ;;  %v560_v58 = vmax.f32 %v536_v17, 0.0  ;;  %v1869_v42 = vld [vmem:[#allocation2 + $0x30] sm:$0xf]  ;;  %1122 = vmatpush.bf16.msra.mxu1 %v1942_v46  ;;  %v301_v46 = vadd.f32 %v2613_v5, %v2419_v52  ;;  %v2143_v5 = vld [vmem:[#allocation2 + $0x14] sm:$0xf0] }
  0xfe   :  { %v1933_v17 = vld [vmem:[#allocation2 + $0xb0] sm:$0xf]  ;;  %v1870_v24 = vor.u32 %v2147_v32, %v1869_v42  ;;  %v1925_v42 = vld [vmem:[#allocation2 + $0xa0] sm:$0xf] }
  0xff   :  { %v579_v57 = vpack.c.bf16 %v559_v23, %v555_v41  ;;  %v580_v12 = vpack.c.bf16 %v560_v58, %v556_v37  ;;  %v2163_v41 = vld [vmem:[#allocation2 + $0xb4] sm:$0xf0]  ;;  %v275_v23 = vadd.f32 %v2561_v15, %v2411_v48  ;;  %v299_v37 = vadd.f32 %v2563_v16, %v2415_v50  ;;  %v2708_v58 = vpop.f32.mrf.mxu2  ;;  %v2145_v50 = vld [vmem:[#allocation2 + $0x24] sm:$0xf0]  ;;  %v2142_v16 = vld [vmem:[#allocation2 + $0x14] sm:$0xf] }
 0x100   :  { %v415_v25 = vpop.f32.mrf.mxu0  ;;  %v439_v11 = vpop.f32.mrf.mxu1  ;;  %v1934_v34 = vor.u32 %v2163_v41, %v1933_v17  ;;  %1099 = vmatpush.bf16.msra.mxu0 %v1870_v24  ;;  %v277_v48 = vadd.f32 %v2611_v3, %v2417_v51  ;;  %v1858_v51 = vor.u32 %v2142_v16, %v1855_v63  ;;  %v2158_v41 = vld [vmem:[#allocation2 + $0x94] sm:$0xf]  ;;  %v2156_v16 = vld [vmem:[#allocation2 + $0x84] sm:$0xf]  ;;  %v2141_v63 = vld [vmem:[#allocation2 + $0x4] sm:$0xf0] }
 0x101   :  { %797 = vmatmul.bf16.vlgmr.msrb.gmra.mxu0 %v579_v57  ;;  %845 = vmatmul.bf16.vlgmr.msrb.gmra.mxu2 %v579_v57  ;;  %v505_v27 = vadd.f32 %v415_v25, %v275_v23  ;;  %v1863_v57 = vld [vmem:[#allocation2 + $0x28] sm:$0xf0]  ;;  %v506_v13 = vadd.f32 %v439_v11, %v299_v37  ;;  %v1862_v25 = vor.u32 %v2145_v50, %v1861_v8  ;;  %v2161_v11 = vld [vmem:[#allocation2 + $0xa4] sm:$0xf0]  ;;  %v1919_v23 = vld [vmem:[#allocation2 + $0x98] sm:$0xf0] }
 0x102   :  { %821 = vmatmul.bf16.vlgmr.msrb.gmra.mxu1 %v580_v12  ;;  %869 = vmatmul.bf16.vlgmr.msrb.gmra.mxu3 %v580_v12  ;;  %v1866_v60 = vor.u32 %v2144_v35, %v1863_v57  ;;  %v1927_v12 = vld [vmem:[#allocation2 + $0xa8] sm:$0xf0]  ;;  %v1926_v3 = vor.u32 %v2161_v11, %v1925_v42  ;;  %v1922_v52 = vor.u32 %v2158_v41, %v1919_v23  ;;  %v1917_v57 = vld [vmem:[#allocation2 + $0x90] sm:$0xf]  ;;  %v1909_v42 = vld [vmem:[#allocation2 + $0x80] sm:$0xf]  ;;  %v482_v41 = vpop.f32.mrf.mxu3 }
 0x103   :  { %1123 = vmatpush.bf16.msra.mxu1 %v1934_v34  ;;  %v1930_v15 = vor.u32 %v2160_v26, %v1927_v12  ;;  %v539_v32 = vadd.f32 %v2687_v19, %v505_v27  ;;  %v1853_v34 = vld [vmem:[#allocation2 + $0x10] sm:$0xf]  ;;  %v540_v37 = vadd.f32 %v2690_v29, %v506_v13  ;;  %v1845_v13 = vld [vmem:[#allocation2] sm:$0xf] }
 0x104   :  { %1148 = vmatpush.bf16.msra.mxu2 %v1866_v60  ;;  %1100 = vmatpush.bf16.msra.mxu0 %v1862_v25  ;;  %v2159_v60 = vld [vmem:[#allocation2 + $0x94] sm:$0xf0]  ;;  %v1854_v27 = vor.u32 %v2143_v5, %v1853_v34 }
 0x105   :  { %1172 = vmatpush.bf16.msra.mxu3 %v1930_v15  ;;  %v1918_v12 = vor.u32 %v2159_v60, %v1917_v57  ;;  %v1847_v15 = vld [vmem:[#allocation2 + $0x8] sm:$0xf0] }
 0x107   :  { %1124 = vmatpush.bf16.msra.mxu1 %v1926_v3  ;;  %v458_v11 = vpop.f32.mrf.mxu2  ;;  %v2157_v3 = vld [vmem:[#allocation2 + $0x84] sm:$0xf0] }
 0x108   :  { %v417_v45 = vpop.f32.mrf.mxu0  ;;  %v441_v24 = vpop.f32.mrf.mxu1  ;;  %1149 = vmatpush.bf16.msra.mxu2 %v1858_v51  ;;  %1101 = vmatpush.bf16.msra.mxu0 %v1854_v27  ;;  %v1910_v57 = vor.u32 %v2157_v3, %v1909_v42  ;;  %v282_v27 = vadd.f32 %v2669_v6, %v2445_v1 }
 0x109   :  { %v509_v17 = vadd.f32 %v417_v45, %v277_v48  ;;  %v510_v35 = vadd.f32 %v441_v24, %v301_v46  ;;  %v2140_v48 = vld [vmem:[#allocation2 + $0x4] sm:$0xf]  ;;  %v1911_v45 = vld [vmem:[#allocation2 + $0x88] sm:$0xf0]  ;;  %v563_v46 = vmax.f32 %v539_v32, 0.0  ;;  %1173 = vmatpush.bf16.msra.mxu3 %v1922_v52  ;;  %v564_v24 = vmax.f32 %v540_v37, 0.0 }
 0x10a   :  { %v1850_v50 = vor.u32 %v2140_v48, %v1847_v15  ;;  %v1914_v34 = vor.u32 %v2156_v16, %v1911_v45  ;;  %v280_v32 = vadd.f32 %v2661_v36, %v2425_v55  ;;  %v304_v37 = vadd.f32 %v2663_v38, %v2427_v56 }
 0x10b   :  { %v543_v26 = vadd.f32 %v2687_v19, %v509_v17  ;;  %v544_v8 = vadd.f32 %v2690_v29, %v510_v35  ;;  %1125 = vmatpush.bf16.msra.mxu1 %v1918_v12  ;;  %v1846_v35 = vor.u32 %v2141_v63, %v1845_v13  ;;  %v306_v12 = vadd.f32 %v2671_v9, %v2447_v2 }
 0x10c   :  { %1150 = vmatpush.bf16.msra.mxu2 %v1850_v50  ;;  %v320_v9 = vadd.f32 %v2633_v14, %v2409_v47  ;;  %v344_v63 = vadd.f32 %v2635_v18, %v2413_v49  ;;  %v525_v47 = vperm.slane %v2680_v10, 2 }
 0x10d   :  { %v567_v25 = vmax.f32 %v543_v26, 0.0  ;;  %v568_v17 = vmax.f32 %v544_v8, 0.0  ;;  %1174 = vmatpush.bf16.msra.mxu3 %v1914_v34  ;;  %1102 = vmatpush.bf16.msra.mxu0 %v1846_v35  ;;  %v484_v8 = vpop.f32.mrf.mxu3  ;;  %v526_v34 = vperm.slane %v2680_v10, 3  ;;  %v2179_v10 = vld [vmem:[%s2930_s11 + $0x38] sm:$0xff] }
 0x10e   :  { %v504_v3 = vadd.f32 %v484_v8, %v344_v63 }
 0x10f   :  { %v581_v23 = vpack.c.bf16 %v567_v25, %v563_v46  ;;  %v582_v5 = vpack.c.bf16 %v568_v17, %v564_v24  ;;  %1126 = vmatpush.bf16.msra.mxu1 %v1910_v57  ;;  %v460_v48 = vpop.f32.mrf.mxu2  ;;  %v342_v17 = vadd.f32 %v2582_v28, %v2403_v44  ;;  %v325_v44 = vadd.f32 %v2673_v33, %v2441_v62 }
 0x110   :  { %v420_v51 = vpop.f32.mrf.mxu0  ;;  %v444_v60 = vpop.f32.mrf.mxu1  ;;  %v538_v49 = vadd.f32 %v526_v34, %v504_v3  ;;  %v349_v28 = vadd.f32 %v2675_v4, %v2443_v0  ;;  %v347_v62 = vadd.f32 %v2667_v40, %v2423_v54  ;;  %v330_v54 = vadd.f32 %v2708_v58, %v2529_v59  ;;  %v2184_v3 = vld [vmem:[%s2930_s11 + $0x60] sm:$0xff] }
 0x111   :  { %802 = vmatmul.bf16.gmra.mxu0 %v581_v23  ;;  %850 = vmatmul.bf16.gmra.mxu2 %v581_v23  ;;  %v513_v52 = vadd.f32 %v420_v51, %v280_v32  ;;  %v514_v26 = vadd.f32 %v444_v60, %v304_v37  ;;  %v500_v14 = vadd.f32 %v482_v41, %v342_v17  ;;  %v2176_v17 = vld [vmem:[%s2930_s11 + $0x20] sm:$0xff] }
 0x112   :  { %826 = vmatmul.bf16.gmra.mxu1 %v582_v5  ;;  %874 = vmatmul.bf16.gmra.mxu3 %v582_v5  ;;  %v562_v57 = vmax.f32 %v538_v49, 0.0  ;;  %v323_v41 = vadd.f32 %v2665_v39, %v2421_v53  ;;  %v2181_v49 = vld [vmem:[%s2930_s11 + $0x48] sm:$0xff] }
 0x113   :  { %v547_v50 = vadd.f32 %v2687_v19, %v513_v52  ;;  %v548_v16 = vadd.f32 %v2690_v29, %v514_v26  ;;  %v534_v51 = vadd.f32 %v526_v34, %v500_v14  ;;  %1535 = vmatpush.bf16.msrb.mxu0 %v2179_v10  ;;  %v2174_v14 = vld [vmem:[%s2930_s11 + $0x10] sm:$0xff] }
 0x114   :  { %v2194_v10 = vld [vmem:[%s2930_s11 + $0xb0] sm:$0xff] }
 0x115   :  { %v571_v13 = vmax.f32 %v547_v50, 0.0  ;;  %v572_v1 = vmax.f32 %v548_v16, 0.0  ;;  %v487_v24 = vpop.f32.mrf.mxu3  ;;  %v558_v32 = vmax.f32 %v534_v51, 0.0  ;;  %v2180_v51 = vld [vmem:[%s2930_s11 + $0x40] sm:$0xff] }
 0x116   :  { %v508_v4 = vadd.f32 %v487_v24, %v347_v62 }
 0x117   :  { %v463_v42 = vpop.f32.mrf.mxu2  ;;  %v586_v52 = vpack.c.bf16 %v562_v57, %v558_v32  ;;  %v2203_v57 = vld [vmem:[%s2930_s11 + $0xf8] sm:$0xff] }
 0x118   :  { %v422_v15 = vpop.f32.mrf.mxu0  ;;  %v446_v36 = vpop.f32.mrf.mxu1  ;;  %v507_v0 = vadd.f32 %v463_v42, %v323_v41  ;;  %v542_v50 = vadd.f32 %v526_v34, %v508_v4  ;;  %1607 = vmatpush.bf16.msrb.mxu3 %v2203_v57 }
 0x119   :  { %v517_v55 = vadd.f32 %v422_v15, %v282_v27  ;;  %v518_v45 = vadd.f32 %v446_v36, %v306_v12 }
 0x11a   :  { %v541_v8 = vadd.f32 %v525_v47, %v507_v0 }
 0x11b   :  { %v551_v56 = vadd.f32 %v2687_v19, %v517_v55  ;;  %v552_v38 = vadd.f32 %v2690_v29, %v518_v45  ;;  %v318_v19 = vadd.f32 %v2574_v20, %v2401_v43  ;;  %v503_v29 = vadd.f32 %v460_v48, %v320_v9 }
 0x11c   :  { %v565_v16 = vmax.f32 %v541_v8, 0.0  ;;  %v566_v45 = vmax.f32 %v542_v50, 0.0  ;;  %v2193_v50 = vld [vmem:[%s2930_s11 + $0xa8] sm:$0xff] }
 0x11d   :  { %v575_v46 = vmax.f32 %v551_v56, 0.0  ;;  %v576_v6 = vmax.f32 %v552_v38, 0.0  ;;  %v499_v23 = vadd.f32 %v458_v11, %v318_v19  ;;  %v537_v35 = vadd.f32 %v525_v47, %v503_v29  ;;  %v489_v20 = vpop.f32.mrf.mxu3  ;;  %v2187_v11 = vld [vmem:[%s2930_s11 + $0x78] sm:$0xff] }
 0x11e   :  { %v512_v33 = vadd.f32 %v489_v20, %v349_v28  ;;  %1559 = vmatpush.bf16.msrb.mxu1 %v2187_v11  ;;  %v354_v38 = vadd.f32 %v2710_v7, %v2533_v61  ;;  %v2202_v11 = vld [vmem:[%s2930_s11 + $0xf0] sm:$0xff] }
 0x11f   :  { %v583_v25 = vpack.c.bf16 %v575_v46, %v571_v13  ;;  %v584_v2 = vpack.c.bf16 %v576_v6, %v572_v1  ;;  %v533_v18 = vadd.f32 %v525_v47, %v499_v23  ;;  %v561_v5 = vmax.f32 %v537_v35, 0.0  ;;  %v465_v60 = vpop.f32.mrf.mxu2  ;;  %v2175_v23 = vld [vmem:[%s2930_s11 + $0x18] sm:$0xff]  ;;  %v2173_v35 = vld [vmem:[%s2930_s11 + $0x8] sm:$0xff]  ;;  %1608 = vmatpush.bf16.msrb.mxu3 %v2202_v11 }
 0x120   :  { %v511_v26 = vadd.f32 %v465_v60, %v325_v44  ;;  %v546_v15 = vadd.f32 %v526_v34, %v512_v33  ;;  %v328_v13 = vadd.f32 %v2697_v31, %v2485_v21  ;;  %v352_v1 = vadd.f32 %v2700_v30, %v2487_v22  ;;  %v2178_v21 = vld [vmem:[%s2930_s11 + $0x30] sm:$0xff]  ;;  %v2177_v31 = vld [vmem:[%s2930_s11 + $0x28] sm:$0xff] }
 0x121   :  { %807 = vmatmul.bf16.gmra.mxu0 %v583_v25  ;;  %855 = vmatmul.bf16.gmra.mxu2 %v583_v25  ;;  %v557_v43 = vmax.f32 %v533_v18, 0.0  ;;  %v2186_v22 = vld [vmem:[%s2930_s11 + $0x70] sm:$0xff]  ;;  %v2185_v30 = vld [vmem:[%s2930_s11 + $0x68] sm:$0xff]  ;;  %v2172_v18 = vld [vmem:[%s2930_s11] sm:$0xff] }
 0x122   :  { %831 = vmatmul.bf16.gmra.mxu1 %v584_v2  ;;  %879 = vmatmul.bf16.gmra.mxu3 %v584_v2  ;;  %v545_v12 = vadd.f32 %v525_v47, %v511_v26  ;;  %v570_v36 = vmax.f32 %v546_v15, 0.0 }
 0x123   :  { %v585_v37 = vpack.c.bf16 %v561_v5, %v557_v43  ;;  %1536 = vmatpush.bf16.msrb.mxu0 %v2178_v21  ;;  %1560 = vmatpush.bf16.msrb.mxu1 %v2186_v22  ;;  %v2195_v5 = vld [vmem:[%s2930_s11 + $0xb8] sm:$0xff]  ;;  %v623_v43 = vld [vmem:[%s2927_s8] sm:$0x3] }
 0x124   :  { %v569_v55 = vmax.f32 %v545_v12, 0.0  ;;  %v588_v56 = vpack.c.bf16 %v570_v36, %v566_v45  ;;  %1583 = vmatpush.bf16.msrb.mxu2 %v2195_v5  ;;  %v2815_v32 = vperm.slane %v623_v43, 1 }
 0x125   :  { %v492_v48 = vpop.f32.mrf.mxu3 }
 0x126   :  { %v587_v53 = vpack.c.bf16 %v569_v55, %v565_v16  ;;  %v516_v2 = vadd.f32 %v492_v48, %v352_v1  ;;  %v2201_v55 = vld [vmem:[%s2930_s11 + $0xe8] sm:$0xff] }
 0x127   :  { %v468_v27 = vpop.f32.mrf.mxu2  ;;  %1537 = vmatpush.bf16.msrb.mxu0 %v2177_v31  ;;  %1561 = vmatpush.bf16.msrb.mxu1 %v2185_v30 }
 0x128   :  { %v515_v25 = vadd.f32 %v468_v27, %v328_v13  ;;  %v550_v63 = vadd.f32 %v526_v34, %v516_v2  ;;  %1584 = vmatpush.bf16.msrb.mxu2 %v2194_v10  ;;  %1609 = vmatpush.bf16.msrb.mxu3 %v2201_v55 }
 0x12a   :  { %v549_v58 = vadd.f32 %v525_v47, %v515_v25  ;;  %v574_v61 = vmax.f32 %v550_v63, 0.0 }
 0x12b   :  { %1538 = vmatpush.bf16.msrb.mxu0 %v2176_v17  ;;  %1562 = vmatpush.bf16.msrb.mxu1 %v2184_v3 }
 0x12c   :  { %v573_v29 = vmax.f32 %v549_v58, 0.0  ;;  %1585 = vmatpush.bf16.msrb.mxu2 %v2193_v50  ;;  %v2191_v58 = vld [vmem:[%s2930_s11 + $0x98] sm:$0xff] }
 0x12d   :  { %v494_v40 = vpop.f32.mrf.mxu3 }
 0x12e   :  { %v520_v6 = vadd.f32 %v494_v40, %v354_v38 }
 0x12f   :  { %v470_v39 = vpop.f32.mrf.mxu2  ;;  %1539 = vmatpush.bf16.msrb.mxu0 %v2175_v23 }
 0x130   :  { %v519_v46 = vadd.f32 %v470_v39, %v330_v54  ;;  %v554_v59 = vadd.f32 %v526_v34, %v520_v6  ;;  %v2182_v34 = vld [vmem:[%s2930_s11 + $0x50] sm:$0xff]  ;;  %v2192_v39 = vld [vmem:[%s2930_s11 + $0xa0] sm:$0xff] }
 0x131   :  { %1103 = vmatmul.bf16.vlgmr.msra.gmra.mxu0 %v585_v37  ;;  %1151 = vmatmul.bf16.vlgmr.msra.gmra.mxu2 %v585_v37  ;;  %v2817_v37 = vperm.slane %v623_v43, 0  ;;  %v2197_v43 = vld [vmem:[%s2930_s11 + $0xc8] sm:$0xff] }
 0x132   :  { %1127 = vmatmul.bf16.vlgmr.msra.gmra.mxu1 %v586_v52  ;;  %1175 = vmatmul.bf16.vlgmr.msra.gmra.mxu3 %v586_v52  ;;  %v553_v9 = vadd.f32 %v525_v47, %v519_v46  ;;  %v578_v19 = vmax.f32 %v554_v59, 0.0  ;;  %v2183_v47 = vld [vmem:[%s2930_s11 + $0x58] sm:$0xff]  ;;  %v2200_v59 = vld [vmem:[%s2930_s11 + $0xe0] sm:$0xff] }
 0x133   :  { %1563 = vmatpush.bf16.msrb.mxu1 %v2183_v47  ;;  %1540 = vmatpush.bf16.msrb.mxu0 %v2174_v14  ;;  %v2190_v47 = vld [vmem:[%s2930_s11 + $0x90] sm:$0xff] }
 0x134   :  { %v577_v42 = vmax.f32 %v553_v9, 0.0  ;;  %v590_v24 = vpack.c.bf16 %v578_v19, %v574_v61  ;;  %1586 = vmatpush.bf16.msrb.mxu2 %v2192_v39  ;;  %1610 = vmatpush.bf16.msrb.mxu3 %v2200_v59  ;;  %v2198_v14 = vld [vmem:[%s2930_s11 + $0xd0] sm:$0xff] }
 0x136   :  { %v589_v7 = vpack.c.bf16 %v577_v42, %v573_v29 }
 0x137   :  { %1564 = vmatpush.bf16.msrb.mxu1 %v2182_v34  ;;  %1541 = vmatpush.bf16.msrb.mxu0 %v2173_v35 }
 0x138   :  { %1587 = vmatpush.bf16.msrb.mxu2 %v2191_v58 }
 0x13b   :  { %1565 = vmatpush.bf16.msrb.mxu1 %v2181_v49  ;;  %1542 = vmatpush.bf16.msrb.mxu0 %v2172_v18 }
 0x13c   :  { %1588 = vmatpush.bf16.msrb.mxu2 %v2190_v47 }
 0x13f   :  { %1566 = vmatpush.bf16.msrb.mxu1 %v2180_v51 }
 0x141   :  { %1108 = vmatmul.bf16.gmra.mxu0 %v587_v53  ;;  %1156 = vmatmul.bf16.gmra.mxu2 %v587_v53 }
 0x142   :  { %1132 = vmatmul.bf16.gmra.mxu1 %v588_v56  ;;  %1180 = vmatmul.bf16.gmra.mxu3 %v588_v56 }
 0x151   :  { %1113 = vmatmul.bf16.gmra.mxu0 %v589_v7  ;;  %1161 = vmatmul.bf16.gmra.mxu2 %v589_v7  ;;  %v2199_v7 = vld [vmem:[%s2930_s11 + $0xd8] sm:$0xff] }
 0x152   :  { %1137 = vmatmul.bf16.gmra.mxu1 %v590_v24  ;;  %1185 = vmatmul.bf16.gmra.mxu3 %v590_v24 }
 0x153   :  { %1611 = vmatpush.bf16.msrb.mxu3 %v2199_v7 }
 0x157   :  { %1612 = vmatpush.bf16.msrb.mxu3 %v2198_v14 }
 0x15b   :  { %1613 = vmatpush.bf16.msrb.mxu3 %v2197_v43 }
 0x17e   :  { %v798_v60 = vpop.f32.mrf.mxu0 }
 0x17f   :  { %v822_v20 = vpop.f32.mrf.mxu1  ;;  %v799_v41 = vadd.f32 %v798_v60, %v2817_v37  ;;  %v2189_v60 = vld [vmem:[%s2930_s11 + $0x88] sm:$0xff] }
 0x180   :  { %1589 = vmatpush.bf16.msrb.mxu2 %v2189_v60 }
 0x181   :  { %v823_v4 = vadd.f32 %v822_v20, %v799_v41 }
 0x183   :  { %v885_v36 = vmax.f32 %v823_v4, 0.0  ;;  %v2196_v4 = vld [vmem:[%s2930_s11 + $0xc0] sm:$0xff] }
 0x184   :  { %v846_v52 = vpop.f32.mrf.mxu2  ;;  %1614 = vmatpush.bf16.msrb.mxu3 %v2196_v4 }
 0x185   :  { %v847_v44 = vadd.f32 %v846_v52, %v2815_v32  ;;  %v870_v28 = vpop.f32.mrf.mxu3 }
 0x186   :  { %v800_v26 = vpop.f32.mrf.mxu0 }
 0x187   :  { %v824_v62 = vpop.f32.mrf.mxu1  ;;  %v871_v33 = vadd.f32 %v870_v28, %v847_v44  ;;  %v801_v0 = vadd.f32 %v800_v26, %v2817_v37 }
 0x189   :  { %v886_v27 = vmax.f32 %v871_v33, 0.0  ;;  %v825_v48 = vadd.f32 %v824_v62, %v801_v0  ;;  %v2188_v0 = vld [vmem:[%s2930_s11 + $0x80] sm:$0xff] }
 0x18a   :  { %1590 = vmatpush.bf16.msrb.mxu2 %v2188_v0 }
 0x18b   :  { %v1203_v56 = vpack.c.bf16 %v886_v27, %v885_v36  ;;  %v887_v54 = vmax.f32 %v825_v48, 0.0 }
 0x18c   :  { %v848_v12 = vpop.f32.mrf.mxu2 }
 0x18d   :  { %v849_v15 = vadd.f32 %v848_v12, %v2815_v32  ;;  %v872_v8 = vpop.f32.mrf.mxu3  ;;  %v1221_v13 = vunpack.c.l.b16 %v1203_v56  ;;  %v1222_v1 = vunpack.c.h.b16 %v1203_v56 }
 0x18e   :  { %v803_v16 = vpop.f32.mrf.mxu0 }
 0x18f   :  { %v873_v45 = vadd.f32 %v872_v8, %v849_v15  ;;  %v827_v53 = vpop.f32.mrf.mxu1  ;;  %v804_v63 = vadd.f32 %v803_v16, %v2817_v37 }
 0x191   :  { %v888_v40 = vmax.f32 %v873_v45, 0.0  ;;  %v828_v22 = vadd.f32 %v827_v53, %v804_v63 }
 0x193   :  { %v1204_v38 = vpack.c.bf16 %v888_v40, %v887_v54  ;;  %v889_v34 = vmax.f32 %v828_v22, 0.0  ;;  %v929_v40 = vld [vmem:[%s2929_s10] sm:$0x3] }
 0x194   :  { %v851_v46 = vpop.f32.mrf.mxu2 }
 0x195   :  { %v1223_v6 = vunpack.c.l.b16 %v1204_v38  ;;  %v1224_v25 = vunpack.c.h.b16 %v1204_v38  ;;  %v852_v2 = vadd.f32 %v851_v46, %v2815_v32  ;;  %v875_v9 = vpop.f32.mrf.mxu3 }
 0x196   :  { %v805_v42 = vpop.f32.mrf.mxu0 }
 0x197   :  { %v1233_v19 = vpack.c.b16 %v1223_v6, %v1221_v13  ;;  %v1234_v29 = vpack.c.b16 %v1224_v25, %v1222_v1  ;;  %v829_v61 = vpop.f32.mrf.mxu1  ;;  %v876_v24 = vadd.f32 %v875_v9, %v852_v2  ;;  %v806_v21 = vadd.f32 %v805_v42, %v2817_v37 }
 0x198   :  { %v2876_v1 = vperm.slane %v929_v40, 1  ;;  %v2878_v6 = vperm.slane %v929_v40, 0 }
 0x199   :  { %1543 = vmatmul.bf16.vlgmr.msrb.gmra.mxu0 %v1233_v19  ;;  %1567 = vmatmul.bf16.vlgmr.msrb.gmra.mxu1 %v1234_v29  ;;  %v890_v31 = vmax.f32 %v876_v24, 0.0  ;;  %v830_v17 = vadd.f32 %v829_v61, %v806_v21 }
 0x19b   :  { %v1205_v51 = vpack.c.bf16 %v890_v31, %v889_v34  ;;  %v891_v5 = vmax.f32 %v830_v17, 0.0 }
 0x19c   :  { %v853_v30 = vpop.f32.mrf.mxu2 }
 0x19d   :  { %v854_v3 = vadd.f32 %v853_v30, %v2815_v32  ;;  %v877_v23 = vpop.f32.mrf.mxu3  ;;  %v1225_v52 = vunpack.c.l.b16 %v1205_v51  ;;  %v1226_v28 = vunpack.c.h.b16 %v1205_v51 }
 0x19e   :  { %v808_v35 = vpop.f32.mrf.mxu0 }
 0x19f   :  { %v878_v49 = vadd.f32 %v877_v23, %v854_v3  ;;  %v832_v18 = vpop.f32.mrf.mxu1  ;;  %v809_v62 = vadd.f32 %v808_v35, %v2817_v37 }
 0x1a1   :  { %v892_v57 = vmax.f32 %v878_v49, 0.0  ;;  %v833_v50 = vadd.f32 %v832_v18, %v809_v62 }
 0x1a3   :  { %v1206_v20 = vpack.c.bf16 %v892_v57, %v891_v5  ;;  %v893_v39 = vmax.f32 %v833_v50, 0.0 }
 0x1a4   :  { %v856_v44 = vpop.f32.mrf.mxu2 }
 0x1a5   :  { %v1227_v10 = vunpack.c.l.b16 %v1206_v20  ;;  %v1228_v11 = vunpack.c.h.b16 %v1206_v20  ;;  %v857_v41 = vadd.f32 %v856_v44, %v2815_v32  ;;  %v880_v26 = vpop.f32.mrf.mxu3 }
 0x1a6   :  { %v810_v33 = vpop.f32.mrf.mxu0 }
 0x1a7   :  { %v834_v27 = vpop.f32.mrf.mxu1  ;;  %v1235_v12 = vpack.c.b16 %v1227_v10, %v1225_v52  ;;  %v1236_v48 = vpack.c.b16 %v1228_v11, %v1226_v28  ;;  %v881_v15 = vadd.f32 %v880_v26, %v857_v41  ;;  %v811_v8 = vadd.f32 %v810_v33, %v2817_v37 }
 0x1a9   :  { %1548 = vmatmul.bf16.gmra.mxu0 %v1235_v12  ;;  %1572 = vmatmul.bf16.gmra.mxu1 %v1236_v48  ;;  %v894_v55 = vmax.f32 %v881_v15, 0.0  ;;  %v835_v16 = vadd.f32 %v834_v27, %v811_v8 }
 0x1ab   :  { %v1207_v13 = vpack.c.bf16 %v894_v55, %v893_v39  ;;  %v895_v46 = vmax.f32 %v835_v16, 0.0 }
 0x1ac   :  { %v858_v36 = vpop.f32.mrf.mxu2 }
 0x1ad   :  { %v859_v45 = vadd.f32 %v858_v36, %v2815_v32  ;;  %v882_v53 = vpop.f32.mrf.mxu3  ;;  %v1229_v2 = vunpack.c.l.b16 %v1207_v13  ;;  %v1230_v32 = vunpack.c.h.b16 %v1207_v13 }
 0x1ae   :  { %v1104_v56 = vpop.f32.mrf.mxu0 }
 0x1af   :  { %v883_v54 = vadd.f32 %v882_v53, %v859_v45  ;;  %v1128_v38 = vpop.f32.mrf.mxu1  ;;  %v1105_v19 = vadd.f32 %v1104_v56, %v2878_v6 }
 0x1b1   :  { %v896_v37 = vmax.f32 %v883_v54, 0.0  ;;  %v1129_v31 = vadd.f32 %v1128_v38, %v1105_v19 }
 0x1b3   :  { %v1208_v25 = vpack.c.bf16 %v896_v37, %v895_v46  ;;  %v1191_v14 = vmax.f32 %v1129_v31, 0.0 }
 0x1b4   :  { %v1152_v9 = vpop.f32.mrf.mxu2 }
 0x1b5   :  { %v1231_v59 = vunpack.c.l.b16 %v1208_v25  ;;  %v1232_v58 = vunpack.c.h.b16 %v1208_v25  ;;  %v1153_v63 = vadd.f32 %v1152_v9, %v2876_v1  ;;  %v1176_v42 = vpop.f32.mrf.mxu3 }
 0x1b6   :  { %v1106_v29 = vpop.f32.mrf.mxu0 }
 0x1b7   :  { %v1130_v61 = vpop.f32.mrf.mxu1  ;;  %v1237_v7 = vpack.c.b16 %v1231_v59, %v1229_v2  ;;  %v1238_v24 = vpack.c.b16 %v1232_v58, %v1230_v32  ;;  %v1177_v21 = vadd.f32 %v1176_v42, %v1153_v63  ;;  %v1107_v22 = vadd.f32 %v1106_v29, %v2878_v6 }
 0x1b9   :  { %1553 = vmatmul.bf16.gmra.mxu0 %v1237_v7  ;;  %1577 = vmatmul.bf16.gmra.mxu1 %v1238_v24  ;;  %v1192_v30 = vmax.f32 %v1177_v21, 0.0  ;;  %v1131_v3 = vadd.f32 %v1130_v61, %v1107_v22 }
 0x1bb   :  { %v1209_v18 = vpack.c.bf16 %v1192_v30, %v1191_v14  ;;  %v1193_v51 = vmax.f32 %v1131_v3, 0.0 }
 0x1bc   :  { %v1154_v17 = vpop.f32.mrf.mxu2 }
 0x1bd   :  { %v1155_v23 = vadd.f32 %v1154_v17, %v2876_v1  ;;  %v1178_v47 = vpop.f32.mrf.mxu3  ;;  %v1251_v60 = vunpack.c.l.b16 %v1209_v18  ;;  %v1252_v20 = vunpack.c.h.b16 %v1209_v18 }
 0x1be   :  { %v1109_v34 = vpop.f32.mrf.mxu0 }
 0x1bf   :  { %v1179_v35 = vadd.f32 %v1178_v47, %v1155_v23  ;;  %v1133_v49 = vpop.f32.mrf.mxu1  ;;  %v1110_v11 = vadd.f32 %v1109_v34, %v2878_v6 }
 0x1c1   :  { %v1194_v5 = vmax.f32 %v1179_v35, 0.0  ;;  %v1134_v27 = vadd.f32 %v1133_v49, %v1110_v11 }
 0x1c3   :  { %v1210_v57 = vpack.c.bf16 %v1194_v5, %v1193_v51  ;;  %v1195_v55 = vmax.f32 %v1134_v27, 0.0 }
 0x1c4   :  { %v1157_v43 = vpop.f32.mrf.mxu2 }
 0x1c5   :  { %v1253_v52 = vunpack.c.l.b16 %v1210_v57  ;;  %v1254_v44 = vunpack.c.h.b16 %v1210_v57  ;;  %v1158_v28 = vadd.f32 %v1157_v43, %v2876_v1  ;;  %v1181_v10 = vpop.f32.mrf.mxu3 }
 0x1c6   :  { %v1111_v41 = vpop.f32.mrf.mxu0 }
 0x1c7   :  { %v1263_v26 = vpack.c.b16 %v1253_v52, %v1251_v60  ;;  %v1264_v62 = vpack.c.b16 %v1254_v44, %v1252_v20  ;;  %v1182_v33 = vadd.f32 %v1181_v10, %v1158_v28  ;;  %v1135_v0 = vpop.f32.mrf.mxu1  ;;  %v1112_v4 = vadd.f32 %v1111_v41, %v2878_v6 }
 0x1c9   :  { %1591 = vmatmul.bf16.vlgmr.msrb.gmra.mxu2 %v1263_v26  ;;  %1615 = vmatmul.bf16.vlgmr.msrb.gmra.mxu3 %v1264_v62  ;;  %v1196_v12 = vmax.f32 %v1182_v33, 0.0  ;;  %v1136_v15 = vadd.f32 %v1135_v0, %v1112_v4 }
 0x1cb   :  { %v1211_v45 = vpack.c.bf16 %v1196_v12, %v1195_v55  ;;  %v1197_v53 = vmax.f32 %v1136_v15, 0.0 }
 0x1cc   :  { %v1159_v48 = vpop.f32.mrf.mxu2 }
 0x1cd   :  { %v1160_v8 = vadd.f32 %v1159_v48, %v2876_v1  ;;  %v1183_v50 = vpop.f32.mrf.mxu3  ;;  %v1255_v40 = vunpack.c.l.b16 %v1211_v45  ;;  %v1256_v13 = vunpack.c.h.b16 %v1211_v45 }
 0x1ce   :  { %v1114_v36 = vpop.f32.mrf.mxu0 }
 0x1cf   :  { %v1184_v16 = vadd.f32 %v1183_v50, %v1160_v8  ;;  %v1138_v56 = vpop.f32.mrf.mxu1  ;;  %v1115_v32 = vadd.f32 %v1114_v36, %v2878_v6 }
 0x1d1   :  { %v1198_v39 = vmax.f32 %v1184_v16, 0.0  ;;  %v1139_v19 = vadd.f32 %v1138_v56, %v1115_v32 }
 0x1d3   :  { %v1212_v54 = vpack.c.bf16 %v1198_v39, %v1197_v53  ;;  %v1199_v31 = vmax.f32 %v1139_v19, 0.0 }
 0x1d4   :  { %v1162_v38 = vpop.f32.mrf.mxu2 }
 0x1d5   :  { %v1257_v46 = vunpack.c.l.b16 %v1212_v54  ;;  %v1258_v37 = vunpack.c.h.b16 %v1212_v54  ;;  %v1163_v25 = vadd.f32 %v1162_v38, %v2876_v1  ;;  %v1186_v2 = vpop.f32.mrf.mxu3 }
 0x1d6   :  { %v1116_v9 = vpop.f32.mrf.mxu0 }
 0x1d7   :  { %v1265_v59 = vpack.c.b16 %v1257_v46, %v1255_v40  ;;  %v1266_v58 = vpack.c.b16 %v1258_v37, %v1256_v13  ;;  %v1187_v63 = vadd.f32 %v1186_v2, %v1163_v25  ;;  %v1117_v42 = vadd.f32 %v1116_v9, %v2878_v6  ;;  %v1140_v29 = vpop.f32.mrf.mxu1 }
 0x1d9   :  { %1596 = vmatmul.bf16.gmra.mxu2 %v1265_v59  ;;  %1620 = vmatmul.bf16.gmra.mxu3 %v1266_v58  ;;  %v1200_v7 = vmax.f32 %v1187_v63, 0.0  ;;  %v1141_v24 = vadd.f32 %v1140_v29, %v1117_v42 }
 0x1db   :  { %v1213_v17 = vpack.c.bf16 %v1200_v7, %v1199_v31  ;;  %v1201_v3 = vmax.f32 %v1141_v24, 0.0 }
 0x1dc   :  { %v1164_v61 = vpop.f32.mrf.mxu2 }
 0x1dd   :  { %v1165_v21 = vadd.f32 %v1164_v61, %v2876_v1  ;;  %v1188_v22 = vpop.f32.mrf.mxu3  ;;  %v1259_v14 = vunpack.c.l.b16 %v1213_v17  ;;  %v1260_v34 = vunpack.c.h.b16 %v1213_v17  ;;  %v2207_v1 = vld [vmem:[%s2931_s12] ss:$0 sm:$0xff] }
 0x1df   :  { %v1189_v30 = vadd.f32 %v1188_v22, %v1165_v21 }
 0x1e1   :  { %v1202_v23 = vmax.f32 %v1189_v30, 0.0 }
 0x1e3   :  { %v1214_v47 = vpack.c.bf16 %v1202_v23, %v1201_v3 }
 0x1e5   :  { %v1261_v35 = vunpack.c.l.b16 %v1214_v47  ;;  %v1262_v6 = vunpack.c.h.b16 %v1214_v47 }
 0x1e7   :  { %v1267_v49 = vpack.c.b16 %v1261_v35, %v1259_v14  ;;  %v1268_v18 = vpack.c.b16 %v1262_v6, %v1260_v34 }
 0x1e9   :  { %1601 = vmatmul.bf16.gmra.mxu2 %v1267_v49  ;;  %1625 = vmatmul.bf16.gmra.mxu3 %v1268_v18 }
 0x216   :  { %v1544_v51 = vpop.f32.mrf.mxu0  ;;  %v1568_v5 = vpop.f32.mrf.mxu1 }
 0x217   :  { %v1545_v60 = vadd.f32 %v2207_v1, %v1544_v51 }
 0x219   :  { %v1569_v20 = vadd.f32 %v1568_v5, %v1545_v60 }
 0x21e   :  { %v1546_v57 = vpop.f32.mrf.mxu0  ;;  %v1570_v43 = vpop.f32.mrf.mxu1 }
 0x21f   :  { %v1547_v11 = vadd.f32 %v2207_v1, %v1546_v57 }
 0x221   :  { %v1571_v26 = vadd.f32 %v1570_v43, %v1547_v11 }
 0x226   :  { %v1549_v28 = vpop.f32.mrf.mxu0  ;;  %v1573_v62 = vpop.f32.mrf.mxu1 }
 0x227   :  { %v1550_v27 = vadd.f32 %v2207_v1, %v1549_v28 }
 0x229   :  { %v1574_v15 = vadd.f32 %v1573_v62, %v1550_v27 }
 0x22e   :  { %v1551_v12 = vpop.f32.mrf.mxu0  ;;  %v1575_v36 = vpop.f32.mrf.mxu1 }
 0x22f   :  { %v1552_v16 = vadd.f32 %v2207_v1, %v1551_v12 }
 0x231   :  { %v1576_v39 = vadd.f32 %v1575_v36, %v1552_v16 }
 0x236   :  { %v1554_v53 = vpop.f32.mrf.mxu0  ;;  %v1578_v46 = vpop.f32.mrf.mxu1 }
 0x237   :  { %v1555_v38 = vadd.f32 %v2207_v1, %v1554_v53 }
 0x239   :  { %v1579_v37 = vadd.f32 %v1578_v46, %v1555_v38 }
 0x23e   :  { %v1556_v25 = vpop.f32.mrf.mxu0  ;;  %v1580_v63 = vpop.f32.mrf.mxu1 }
 0x23f   :  { %v1557_v59 = vadd.f32 %v2207_v1, %v1556_v25 }
 0x241   :  { %v1581_v42 = vadd.f32 %v1580_v63, %v1557_v59 }
 0x24c   :  { %v1592_v52 = vpop.f32.mrf.mxu2  ;;  %v1616_v44 = vpop.f32.mrf.mxu3 }
 0x24d   :  { %v1593_v10 = vadd.f32 %v1592_v52, %v1569_v20 }
 0x24f   :  { %v1617_v41 = vadd.f32 %v1616_v44, %v1593_v10 }
 0x251   :  { %1632 = vst.msk [vmem:[%s2932_s13] sm:$0xff] %vm1631_vm4, %v1617_v41 }
 0x254   :  { %v1594_v33 = vpop.f32.mrf.mxu2  ;;  %v1618_v0 = vpop.f32.mrf.mxu3 }
 0x255   :  { %v1595_v4 = vadd.f32 %v1594_v33, %v1571_v26 }
 0x257   :  { %v1619_v48 = vadd.f32 %v1618_v0, %v1595_v4 }
 0x259   :  { %1633 = vst.msk [vmem:[%s2932_s13 + $0x8] sm:$0xff] %vm1631_vm4, %v1619_v48 }
 0x25c   :  { %v1597_v8 = vpop.f32.mrf.mxu2  ;;  %v1621_v50 = vpop.f32.mrf.mxu3 }
 0x25d   :  { %v1598_v55 = vadd.f32 %v1597_v8, %v1574_v15 }
 0x25f   :  { %v1622_v45 = vadd.f32 %v1621_v50, %v1598_v55 }
 0x261   :  { %1634 = vst.msk [vmem:[%s2932_s13 + $0x10] sm:$0xff] %vm1631_vm4, %v1622_v45 }
 0x264   :  { %v1599_v56 = vpop.f32.mrf.mxu2  ;;  %v1623_v54 = vpop.f32.mrf.mxu3 }
 0x265   :  { %v1600_v40 = vadd.f32 %v1599_v56, %v1576_v39 }
 0x267   :  { %v1624_v13 = vadd.f32 %v1623_v54, %v1600_v40 }
 0x269   :  { %1635 = vst.msk [vmem:[%s2932_s13 + $0x18] sm:$0xff] %vm1631_vm4, %v1624_v13 }
 0x26c   :  { %v1602_v2 = vpop.f32.mrf.mxu2  ;;  %v1626_v9 = vpop.f32.mrf.mxu3 }
 0x26d   :  { %v1603_v32 = vadd.f32 %v1602_v2, %v1579_v37 }
 0x26f   :  { %v1627_v58 = vadd.f32 %v1626_v9, %v1603_v32 }
 0x271   :  { %1636 = vst.msk [vmem:[%s2932_s13 + $0x20] sm:$0xff] %vm1631_vm4, %v1627_v58 }
 0x274   :  { %v1604_v19 = vpop.f32.mrf.mxu2  ;;  %v1628_v61 = vpop.f32.mrf.mxu3 }
 0x275   :  { %v1605_v29 = vadd.f32 %v1604_v19, %v1581_v42 }
 0x277   :  { %v1629_v7 = vadd.f32 %v1628_v61, %v1605_v29 }
 0x279   :  { %1637 = vst.msk [vmem:[%s2932_s13 + $0x28] sm:$0xff] %vm1631_vm4, %v1629_v7 }
 0x27a   :  { %1642 = vsyncpa [#allocation3], 1 }

</bundles_post_ra>
